<compile_context>
chip_gen: v5e
topology: v5e:2x2
jax: 0.10.0
libtpu: 0.0.40
codegen_flags: <defaults>
</compile_context>

<pallas_src>
import math
import functools

import jax
import jax.numpy as jnp
from jax.experimental import pallas as pl
from jax.experimental.pallas import tpu as pltpu


def _softplus(x):
    # torch.nn.functional.softplus(beta=1, threshold=20)
    return jnp.where(x > 20.0, x, jnp.log(1.0 + jnp.exp(jnp.minimum(x, 20.0))))


# ----------------------------------------------------------------------------
# Fused kernel: all Layer_EIB_1DPE layers in one pallas_call.
# Ref order:
#   x0 [K, N, C0] (bf16),
#   per hidden layer i: W1m, W1s, W2m, W2s (bf16), gamma_m, beta_m, gamma_s,
#                       beta_s ([1, out] f32), eps_mean, eps_sq_mean ([K,N,out] f32),
#   last layer: W1m, W2m (bf16),
#   outputs: p [K, N, out_last] f32, ixz [N, 1] f32.
# ----------------------------------------------------------------------------
def eib_gnn_kernel(*refs, dims, K):
    num_layers = len(dims) - 1

    x_ref = refs[0]
    idx = 1
    layer_refs = []
    for i in range(num_layers):
        n_args = 10 if i != num_layers - 1 else 2
        layer_refs.append(refs[idx:idx + n_args])
        idx += n_args
    p_ref, ixz_ref = refs[idx], refs[idx + 1]

    N = x_ref.shape[1]
    inv_k = 1.0 / float(K)
    inv_nk = 1.0 / float(N * K)

    # K activation blocks, one per permutation member (bf16 at layer 0).
    x_list = [x_ref[k] for k in range(K)]
    acc = jnp.zeros((N, 1), jnp.float32)                      # running I_XZ per n

    for i in range(num_layers):                               # static: few layers
        is_last = (i == num_layers - 1)
        out = dims[i + 1]

        # mean over the K permutation members (f32 accumulate)
        xm = x_list[0].astype(jnp.float32)
        for k in range(1, K):
            xm = xm + x_list[k].astype(jnp.float32)
        xm_bf = (xm * inv_k).astype(jnp.bfloat16)             # [N, c_in]

        if not is_last:
            (W1m, W1s, W2m, W2s, g_m, b_m, g_s, b_s,
             em_ref, e2_ref) = layer_refs[i]

            # P2 branch once, on the K-group means (0.1 folded into W2*).
            y2m = jnp.dot(xm_bf, W2m[...], preferred_element_type=jnp.float32)
            y2s = jnp.dot(xm_bf, W2s[...], preferred_element_type=jnp.float32)

            ym, ys = [], []
            for k in range(K):
                xb = x_list[k].astype(jnp.bfloat16)
                a_m = jnp.dot(xb, W1m[...], preferred_element_type=jnp.float32) + y2m
                a_s = jnp.dot(xb, W1s[...], preferred_element_type=jnp.float32) + y2s
                ym.append(jnp.maximum(a_m, 0.0))              # ReLU
                ys.append(jnp.maximum(a_s, 0.0))

            # BatchNorm1d (training mode): per-channel stats over all N*K rows,
            # biased variance, two-pass for precision.
            mu_m = jnp.zeros((1, out), jnp.float32)
            mu_s = jnp.zeros((1, out), jnp.float32)
            for k in range(K):
                mu_m = mu_m + jnp.sum(ym[k], axis=0, keepdims=True)
                mu_s = mu_s + jnp.sum(ys[k], axis=0, keepdims=True)
            mu_m = mu_m * inv_nk
            mu_s = mu_s * inv_nk

            dm, ds = [], []
            var_m = jnp.zeros((1, out), jnp.float32)
            var_s = jnp.zeros((1, out), jnp.float32)
            for k in range(K):
                d1 = ym[k] - mu_m
                d2 = ys[k] - mu_s
                dm.append(d1)
                ds.append(d2)
                var_m = var_m + jnp.sum(d1 * d1, axis=0, keepdims=True)
                var_s = var_s + jnp.sum(d2 * d2, axis=0, keepdims=True)
            var_m = var_m * inv_nk
            var_s = var_s * inv_nk

            sc_m = jax.lax.rsqrt(var_m + 1e-5) * g_m[...]
            sc_s = jax.lax.rsqrt(var_s + 1e-5) * g_s[...]

            x_next = []
            for k in range(K):
                mean_k = dm[k] * sc_m + b_m[...]              # post-BN mean half
                std_k = _softplus(ds[k] * sc_s + b_s[...]) + 1e-10

                # I_XZ per element, closed form over the S samples:
                #   -log(std) + 0.5*mean^2 + mean*std*E[eps] + 0.5*(std^2-1)*E[eps^2]
                em = em_ref[k]
                e2 = e2_ref[k]
                elem = (0.5 * mean_k * mean_k
                        + mean_k * std_k * em
                        + 0.5 * (std_k * std_k - 1.0) * e2
                        - jnp.log(std_k))
                acc = acc + jnp.sum(elem, axis=-1, keepdims=True)
                x_next.append(mean_k)                         # A_output feeds next layer
            x_list = x_next
        else:
            # last layer: no ReLU / BN; std half and its I_XZ are discarded,
            # so only the mean-half weights were passed in.
            (W1m, W2m) = layer_refs[i]
            y2m = jnp.dot(xm_bf, W2m[...], preferred_element_type=jnp.float32)
            for k in range(K):
                xb = x_list[k].astype(jnp.bfloat16)
                p_ref[k] = jnp.dot(xb, W1m[...],
                                   preferred_element_type=jnp.float32) + y2m

    ixz_ref[...] = acc


# ----------------------------------------------------------------------------
# Parameter init (matches torch shapes / uniform ranges); weights pre-split
# into mean/std halves, transposed, 0.1 folded into the P2 halves, bf16.
# ----------------------------------------------------------------------------
def init_layer_params(key, input_dim, output_dim, is_last):
    k1, k2 = jax.random.split(key)
    ini = math.sqrt(3.0 / output_dim / 2.0 / input_dim)
    P1 = jax.random.uniform(k1, (2 * output_dim, input_dim), jnp.float32, -ini, ini)
    P2 = jax.random.uniform(k2, (2 * output_dim, input_dim), jnp.float32, -ini, ini)
    p = {
        "W1m": P1[:output_dim, :].T.astype(jnp.bfloat16),            # [in, out]
        "W2m": (0.1 * P2[:output_dim, :]).T.astype(jnp.bfloat16),
    }
    if not is_last:
        p["W1s"] = P1[output_dim:, :].T.astype(jnp.bfloat16)
        p["W2s"] = (0.1 * P2[output_dim:, :]).T.astype(jnp.bfloat16)
        p["gamma_m"] = jnp.ones((1, output_dim), jnp.float32)
        p["beta_m"] = jnp.zeros((1, output_dim), jnp.float32)
        p["gamma_s"] = jnp.ones((1, output_dim), jnp.float32)
        p["beta_s"] = jnp.zeros((1, output_dim), jnp.float32)
    return p


# ----------------------------------------------------------------------------
# EIB_GNN1D_K_Power.forward
# ----------------------------------------------------------------------------
def eib_gnn1d_k_power_forward(params_list, dims, Hhat, Vhat, nbrOfRealizations,
                              L, K, U, batch_size, sample_size, key):
    B, R = batch_size, nbrOfRealizations
    N = B * R
    num_layers = len(dims) - 1
    num_hidden = num_layers - 1

    # Hhat_updated in the kernel layout: x0[k, n, (part, l, u)] = {re,im}[n,l,k,u]
    H = Hhat.reshape(N, L, K, U)
    Hcat = jnp.stack([jnp.real(H), jnp.imag(H)], axis=1)      # [N, 2, L, K, U]
    Hcat = jnp.transpose(Hcat, (3, 0, 1, 2, 4))               # [K, N, 2, L, U]
    x0 = Hcat.reshape(K, N, 2 * L * U).astype(jnp.bfloat16)

    # reparameterization-noise moments per hidden layer (plain JAX; only the
    # per-element E_s[eps] and E_s[eps^2] are needed in-kernel).
    noise_keys = jax.random.split(key, max(num_hidden, 1))
    args = [x0]
    for i in range(num_layers):
        p = params_list[i]
        if i != num_layers - 1:
            out_i = dims[i + 1]
            eps = jax.random.normal(noise_keys[i], (sample_size, K, N, out_i),
                                    jnp.float32)
            em = jnp.mean(eps, axis=0)
            e2 = jnp.mean(eps * eps, axis=0)
            args += [p["W1m"], p["W1s"], p["W2m"], p["W2s"],
                     p["gamma_m"], p["beta_m"], p["gamma_s"], p["beta_s"],
                     em, e2]
        else:
            args += [p["W1m"], p["W2m"]]

    vmem = pl.BlockSpec(memory_space=pltpu.MemorySpace.VMEM)
    kernel = functools.partial(eib_gnn_kernel, dims=tuple(dims), K=K)

    p_out, ixz = pl.pallas_call(
        kernel,
        out_shape=(jax.ShapeDtypeStruct((K, N, dims[-1]), jnp.float32),
                   jax.ShapeDtypeStruct((N, 1), jnp.float32)),
        in_specs=[vmem] * len(args),
        out_specs=(vmem, vmem),
    )(*args)

    # ---- final precoding (complex math) in plain JAX ------------------------
    Phat_u1 = jnp.transpose(p_out, (1, 2, 0)).reshape(B, R, L, K)   # [B,R,L,K]
    # TODO(synk): no epsilon in the column norm, matching the torch reference.
    nrm = jnp.sqrt(jnp.sum(jnp.square(Phat_u1), axis=2, keepdims=True))
    Phat_u = Phat_u1 / nrm * math.sqrt(L)
    Fhat_u = Vhat.reshape(B, R, L, K, U) * Phat_u[..., None]
    I_XZ_tot = ixz[:, 0]                                            # [N]
    return Fhat_u, I_XZ_tot


# ----------------------------------------------------------------------------
if __name__ == "__main__":
    B, R, L, K, U = 2, 2, 8, 4, 2
    input_dim = 2 * L * U          # layer-0 input channels of Hhat_updated
    hidden_dim = (32,)
    output_dim = L                 # required so the output can be viewed [B,R,L,K]
    sample_size = 3

    key = jax.random.PRNGKey(0)
    k_h, k_v, k_p, k_n = jax.random.split(key, 4)

    Hhat = (jax.random.normal(k_h, (B, R, L, K, U), jnp.float32)
            + 1j * jax.random.normal(jax.random.fold_in(k_h, 1),
                                     (B, R, L, K, U), jnp.float32)
            ).astype(jnp.complex64)
    Vhat = (jax.random.normal(k_v, (B, R, L, K, U), jnp.float32)
            + 1j * jax.random.normal(jax.random.fold_in(k_v, 1),
                                     (B, R, L, K, U), jnp.float32)
            ).astype(jnp.complex64)

    dims = [input_dim] + list(hidden_dim) + [output_dim]
    params_list = [
        init_layer_params(jax.random.fold_in(k_p, i), dims[i], dims[i + 1],
                          is_last=(i == len(dims) - 2))
        for i in range(len(dims) - 1)
    ]

    Fhat_u, I_XZ_tot = eib_gnn1d_k_power_forward(
        params_list, dims, Hhat, Vhat, R, L, K, U, B, sample_size, k_n)

    jax.block_until_ready((Fhat_u, I_XZ_tot))
    assert Fhat_u.shape == (B, R, L, K, U) and Fhat_u.dtype == jnp.complex64
    assert I_XZ_tot.shape == (B * R,)
    assert bool(jnp.all(jnp.isfinite(I_XZ_tot)))
    assert bool(jnp.all(jnp.isfinite(jnp.abs(Fhat_u))))
    print("KERNEL_OK")
</pallas_src>

<mosaic_0001>
module attributes {stable_mosaic.version = 11 : i64} {
  func.func @eib_gnn_kernel(%arg0: memref<4x4x32xbf16, #tpu.memory_space<vmem>>, %arg1: memref<32x32xbf16, #tpu.memory_space<vmem>>, %arg2: memref<32x32xbf16, #tpu.memory_space<vmem>>, %arg3: memref<32x32xbf16, #tpu.memory_space<vmem>>, %arg4: memref<32x32xbf16, #tpu.memory_space<vmem>>, %arg5: memref<1x32xf32, #tpu.memory_space<vmem>>, %arg6: memref<1x32xf32, #tpu.memory_space<vmem>>, %arg7: memref<1x32xf32, #tpu.memory_space<vmem>>, %arg8: memref<1x32xf32, #tpu.memory_space<vmem>>, %arg9: memref<4x4x32xf32, #tpu.memory_space<vmem>>, %arg10: memref<4x4x32xf32, #tpu.memory_space<vmem>>, %arg11: memref<32x8xbf16, #tpu.memory_space<vmem>>, %arg12: memref<32x8xbf16, #tpu.memory_space<vmem>>, %arg13: memref<4x4x8xf32, #tpu.memory_space<vmem>>, %arg14: memref<4x1xf32, #tpu.memory_space<vmem>>) attributes {dimension_semantics = [], scalar_prefetch = 0 : i64, scratch_operands = 0 : i64, tpu.core_type = #tpu.core_type<tc>} {
    %c0 = arith.constant 0 : index
    %c0_0 = arith.constant 0 : index
    %c0_1 = arith.constant 0 : index
    %0 = vector.load %arg0[%c0, %c0_0, %c0_1] : memref<4x4x32xbf16, #tpu.memory_space<vmem>>, vector<1x4x32xbf16>
    %1 = vector.shape_cast %0 : vector<1x4x32xbf16> to vector<4x32xbf16>
    %c1 = arith.constant 1 : index
    %c0_2 = arith.constant 0 : index
    %c0_3 = arith.constant 0 : index
    %2 = vector.load %arg0[%c1, %c0_2, %c0_3] : memref<4x4x32xbf16, #tpu.memory_space<vmem>>, vector<1x4x32xbf16>
    %3 = vector.shape_cast %2 : vector<1x4x32xbf16> to vector<4x32xbf16>
    %c2 = arith.constant 2 : index
    %c0_4 = arith.constant 0 : index
    %c0_5 = arith.constant 0 : index
    %4 = vector.load %arg0[%c2, %c0_4, %c0_5] : memref<4x4x32xbf16, #tpu.memory_space<vmem>>, vector<1x4x32xbf16>
    %5 = vector.shape_cast %4 : vector<1x4x32xbf16> to vector<4x32xbf16>
    %c3 = arith.constant 3 : index
    %c0_6 = arith.constant 0 : index
    %c0_7 = arith.constant 0 : index
    %6 = vector.load %arg0[%c3, %c0_6, %c0_7] : memref<4x4x32xbf16, #tpu.memory_space<vmem>>, vector<1x4x32xbf16>
    %7 = vector.shape_cast %6 : vector<1x4x32xbf16> to vector<4x32xbf16>
    %cst = arith.constant 0.000000e+00 : f32
    %8 = vector.broadcast %cst : f32 to vector<4x1xf32>
    %9 = arith.extf %1 : vector<4x32xbf16> to vector<4x32xf32>
    %10 = arith.extf %3 : vector<4x32xbf16> to vector<4x32xf32>
    %11 = arith.addf %9, %10 : vector<4x32xf32>
    %12 = arith.extf %5 : vector<4x32xbf16> to vector<4x32xf32>
    %13 = arith.addf %11, %12 : vector<4x32xf32>
    %14 = arith.extf %7 : vector<4x32xbf16> to vector<4x32xf32>
    %15 = arith.addf %13, %14 : vector<4x32xf32>
    %cst_8 = arith.constant 2.500000e-01 : f32
    %16 = vector.broadcast %cst_8 : f32 to vector<4x32xf32>
    %17 = arith.mulf %15, %16 : vector<4x32xf32>
    %18 = arith.truncf %17 : vector<4x32xf32> to vector<4x32xbf16>
    %c0_9 = arith.constant 0 : index
    %c0_10 = arith.constant 0 : index
    %19 = vector.load %arg3[%c0_9, %c0_10] : memref<32x32xbf16, #tpu.memory_space<vmem>>, vector<32x32xbf16>
    %cst_11 = arith.constant dense<0.000000e+00> : vector<4x32xf32>
    %20 = tpu.matmul %18, %19, %cst_11 {dimension_numbers = #tpu.dot_dimension_numbers<[1], [0], [0], [1], [0, 0, 1, 1], [], []>} : vector<4x32xbf16>, vector<32x32xbf16>, vector<4x32xf32> -> vector<4x32xf32>
    %c0_12 = arith.constant 0 : index
    %c0_13 = arith.constant 0 : index
    %21 = vector.load %arg4[%c0_12, %c0_13] : memref<32x32xbf16, #tpu.memory_space<vmem>>, vector<32x32xbf16>
    %cst_14 = arith.constant dense<0.000000e+00> : vector<4x32xf32>
    %22 = tpu.matmul %18, %21, %cst_14 {dimension_numbers = #tpu.dot_dimension_numbers<[1], [0], [0], [1], [0, 0, 1, 1], [], []>} : vector<4x32xbf16>, vector<32x32xbf16>, vector<4x32xf32> -> vector<4x32xf32>
    %c0_15 = arith.constant 0 : index
    %c0_16 = arith.constant 0 : index
    %23 = vector.load %arg1[%c0_15, %c0_16] : memref<32x32xbf16, #tpu.memory_space<vmem>>, vector<32x32xbf16>
    %cst_17 = arith.constant dense<0.000000e+00> : vector<4x32xf32>
    %24 = tpu.matmul %1, %23, %cst_17 {dimension_numbers = #tpu.dot_dimension_numbers<[1], [0], [0], [1], [0, 0, 1, 1], [], []>} : vector<4x32xbf16>, vector<32x32xbf16>, vector<4x32xf32> -> vector<4x32xf32>
    %25 = arith.addf %24, %20 : vector<4x32xf32>
    %c0_18 = arith.constant 0 : index
    %c0_19 = arith.constant 0 : index
    %26 = vector.load %arg2[%c0_18, %c0_19] : memref<32x32xbf16, #tpu.memory_space<vmem>>, vector<32x32xbf16>
    %cst_20 = arith.constant dense<0.000000e+00> : vector<4x32xf32>
    %27 = tpu.matmul %1, %26, %cst_20 {dimension_numbers = #tpu.dot_dimension_numbers<[1], [0], [0], [1], [0, 0, 1, 1], [], []>} : vector<4x32xbf16>, vector<32x32xbf16>, vector<4x32xf32> -> vector<4x32xf32>
    %28 = arith.addf %27, %22 : vector<4x32xf32>
    %cst_21 = arith.constant 0.000000e+00 : f32
    %29 = vector.broadcast %cst_21 : f32 to vector<4x32xf32>
    %30 = arith.maximumf %25, %29 : vector<4x32xf32>
    %cst_22 = arith.constant 0.000000e+00 : f32
    %31 = vector.broadcast %cst_22 : f32 to vector<4x32xf32>
    %32 = arith.maximumf %28, %31 : vector<4x32xf32>
    %c0_23 = arith.constant 0 : index
    %c0_24 = arith.constant 0 : index
    %33 = vector.load %arg1[%c0_23, %c0_24] : memref<32x32xbf16, #tpu.memory_space<vmem>>, vector<32x32xbf16>
    %cst_25 = arith.constant dense<0.000000e+00> : vector<4x32xf32>
    %34 = tpu.matmul %3, %33, %cst_25 {dimension_numbers = #tpu.dot_dimension_numbers<[1], [0], [0], [1], [0, 0, 1, 1], [], []>} : vector<4x32xbf16>, vector<32x32xbf16>, vector<4x32xf32> -> vector<4x32xf32>
    %35 = arith.addf %34, %20 : vector<4x32xf32>
    %c0_26 = arith.constant 0 : index
    %c0_27 = arith.constant 0 : index
    %36 = vector.load %arg2[%c0_26, %c0_27] : memref<32x32xbf16, #tpu.memory_space<vmem>>, vector<32x32xbf16>
    %cst_28 = arith.constant dense<0.000000e+00> : vector<4x32xf32>
    %37 = tpu.matmul %3, %36, %cst_28 {dimension_numbers = #tpu.dot_dimension_numbers<[1], [0], [0], [1], [0, 0, 1, 1], [], []>} : vector<4x32xbf16>, vector<32x32xbf16>, vector<4x32xf32> -> vector<4x32xf32>
    %38 = arith.addf %37, %22 : vector<4x32xf32>
    %cst_29 = arith.constant 0.000000e+00 : f32
    %39 = vector.broadcast %cst_29 : f32 to vector<4x32xf32>
    %40 = arith.maximumf %35, %39 : vector<4x32xf32>
    %cst_30 = arith.constant 0.000000e+00 : f32
    %41 = vector.broadcast %cst_30 : f32 to vector<4x32xf32>
    %42 = arith.maximumf %38, %41 : vector<4x32xf32>
    %c0_31 = arith.constant 0 : index
    %c0_32 = arith.constant 0 : index
    %43 = vector.load %arg1[%c0_31, %c0_32] : memref<32x32xbf16, #tpu.memory_space<vmem>>, vector<32x32xbf16>
    %cst_33 = arith.constant dense<0.000000e+00> : vector<4x32xf32>
    %44 = tpu.matmul %5, %43, %cst_33 {dimension_numbers = #tpu.dot_dimension_numbers<[1], [0], [0], [1], [0, 0, 1, 1], [], []>} : vector<4x32xbf16>, vector<32x32xbf16>, vector<4x32xf32> -> vector<4x32xf32>
    %45 = arith.addf %44, %20 : vector<4x32xf32>
    %c0_34 = arith.constant 0 : index
    %c0_35 = arith.constant 0 : index
    %46 = vector.load %arg2[%c0_34, %c0_35] : memref<32x32xbf16, #tpu.memory_space<vmem>>, vector<32x32xbf16>
    %cst_36 = arith.constant dense<0.000000e+00> : vector<4x32xf32>
    %47 = tpu.matmul %5, %46, %cst_36 {dimension_numbers = #tpu.dot_dimension_numbers<[1], [0], [0], [1], [0, 0, 1, 1], [], []>} : vector<4x32xbf16>, vector<32x32xbf16>, vector<4x32xf32> -> vector<4x32xf32>
    %48 = arith.addf %47, %22 : vector<4x32xf32>
    %cst_37 = arith.constant 0.000000e+00 : f32
    %49 = vector.broadcast %cst_37 : f32 to vector<4x32xf32>
    %50 = arith.maximumf %45, %49 : vector<4x32xf32>
    %cst_38 = arith.constant 0.000000e+00 : f32
    %51 = vector.broadcast %cst_38 : f32 to vector<4x32xf32>
    %52 = arith.maximumf %48, %51 : vector<4x32xf32>
    %c0_39 = arith.constant 0 : index
    %c0_40 = arith.constant 0 : index
    %53 = vector.load %arg1[%c0_39, %c0_40] : memref<32x32xbf16, #tpu.memory_space<vmem>>, vector<32x32xbf16>
    %cst_41 = arith.constant dense<0.000000e+00> : vector<4x32xf32>
    %54 = tpu.matmul %7, %53, %cst_41 {dimension_numbers = #tpu.dot_dimension_numbers<[1], [0], [0], [1], [0, 0, 1, 1], [], []>} : vector<4x32xbf16>, vector<32x32xbf16>, vector<4x32xf32> -> vector<4x32xf32>
    %55 = arith.addf %54, %20 : vector<4x32xf32>
    %c0_42 = arith.constant 0 : index
    %c0_43 = arith.constant 0 : index
    %56 = vector.load %arg2[%c0_42, %c0_43] : memref<32x32xbf16, #tpu.memory_space<vmem>>, vector<32x32xbf16>
    %cst_44 = arith.constant dense<0.000000e+00> : vector<4x32xf32>
    %57 = tpu.matmul %7, %56, %cst_44 {dimension_numbers = #tpu.dot_dimension_numbers<[1], [0], [0], [1], [0, 0, 1, 1], [], []>} : vector<4x32xbf16>, vector<32x32xbf16>, vector<4x32xf32> -> vector<4x32xf32>
    %58 = arith.addf %57, %22 : vector<4x32xf32>
    %cst_45 = arith.constant 0.000000e+00 : f32
    %59 = vector.broadcast %cst_45 : f32 to vector<4x32xf32>
    %60 = arith.maximumf %55, %59 : vector<4x32xf32>
    %cst_46 = arith.constant 0.000000e+00 : f32
    %61 = vector.broadcast %cst_46 : f32 to vector<4x32xf32>
    %62 = arith.maximumf %58, %61 : vector<4x32xf32>
    %cst_47 = arith.constant 0.000000e+00 : f32
    %63 = vector.broadcast %cst_47 : f32 to vector<1x32xf32>
    %cst_48 = arith.constant 0.000000e+00 : f32
    %64 = vector.broadcast %cst_48 : f32 to vector<1x32xf32>
    %cst_49 = arith.constant dense<0.000000e+00> : vector<32xf32>
    %65 = vector.multi_reduction <add>, %30, %cst_49 [0] : vector<4x32xf32> to vector<32xf32>
    %66 = vector.shape_cast %65 : vector<32xf32> to vector<1x32xf32>
    %67 = arith.addf %63, %66 : vector<1x32xf32>
    %cst_50 = arith.constant dense<0.000000e+00> : vector<32xf32>
    %68 = vector.multi_reduction <add>, %32, %cst_50 [0] : vector<4x32xf32> to vector<32xf32>
    %69 = vector.shape_cast %68 : vector<32xf32> to vector<1x32xf32>
    %70 = arith.addf %64, %69 : vector<1x32xf32>
    %cst_51 = arith.constant dense<0.000000e+00> : vector<32xf32>
    %71 = vector.multi_reduction <add>, %40, %cst_51 [0] : vector<4x32xf32> to vector<32xf32>
    %72 = vector.shape_cast %71 : vector<32xf32> to vector<1x32xf32>
    %73 = arith.addf %67, %72 : vector<1x32xf32>
    %cst_52 = arith.constant dense<0.000000e+00> : vector<32xf32>
    %74 = vector.multi_reduction <add>, %42, %cst_52 [0] : vector<4x32xf32> to vector<32xf32>
    %75 = vector.shape_cast %74 : vector<32xf32> to vector<1x32xf32>
    %76 = arith.addf %70, %75 : vector<1x32xf32>
    %cst_53 = arith.constant dense<0.000000e+00> : vector<32xf32>
    %77 = vector.multi_reduction <add>, %50, %cst_53 [0] : vector<4x32xf32> to vector<32xf32>
    %78 = vector.shape_cast %77 : vector<32xf32> to vector<1x32xf32>
    %79 = arith.addf %73, %78 : vector<1x32xf32>
    %cst_54 = arith.constant dense<0.000000e+00> : vector<32xf32>
    %80 = vector.multi_reduction <add>, %52, %cst_54 [0] : vector<4x32xf32> to vector<32xf32>
    %81 = vector.shape_cast %80 : vector<32xf32> to vector<1x32xf32>
    %82 = arith.addf %76, %81 : vector<1x32xf32>
    %cst_55 = arith.constant dense<0.000000e+00> : vector<32xf32>
    %83 = vector.multi_reduction <add>, %60, %cst_55 [0] : vector<4x32xf32> to vector<32xf32>
    %84 = vector.shape_cast %83 : vector<32xf32> to vector<1x32xf32>
    %85 = arith.addf %79, %84 : vector<1x32xf32>
    %cst_56 = arith.constant dense<0.000000e+00> : vector<32xf32>
    %86 = vector.multi_reduction <add>, %62, %cst_56 [0] : vector<4x32xf32> to vector<32xf32>
    %87 = vector.shape_cast %86 : vector<32xf32> to vector<1x32xf32>
    %88 = arith.addf %82, %87 : vector<1x32xf32>
    %cst_57 = arith.constant 6.250000e-02 : f32
    %89 = vector.broadcast %cst_57 : f32 to vector<1x32xf32>
    %90 = arith.mulf %85, %89 : vector<1x32xf32>
    %cst_58 = arith.constant 6.250000e-02 : f32
    %91 = vector.broadcast %cst_58 : f32 to vector<1x32xf32>
    %92 = arith.mulf %88, %91 : vector<1x32xf32>
    %cst_59 = arith.constant 0.000000e+00 : f32
    %93 = vector.broadcast %cst_59 : f32 to vector<1x32xf32>
    %cst_60 = arith.constant 0.000000e+00 : f32
    %94 = vector.broadcast %cst_60 : f32 to vector<1x32xf32>
    %95 = vector.broadcast %90 : vector<1x32xf32> to vector<4x32xf32>
    %96 = arith.subf %30, %95 : vector<4x32xf32>
    %97 = vector.broadcast %92 : vector<1x32xf32> to vector<4x32xf32>
    %98 = arith.subf %32, %97 : vector<4x32xf32>
    %99 = arith.mulf %96, %96 : vector<4x32xf32>
    %cst_61 = arith.constant dense<0.000000e+00> : vector<32xf32>
    %100 = vector.multi_reduction <add>, %99, %cst_61 [0] : vector<4x32xf32> to vector<32xf32>
    %101 = vector.shape_cast %100 : vector<32xf32> to vector<1x32xf32>
    %102 = arith.addf %93, %101 : vector<1x32xf32>
    %103 = arith.mulf %98, %98 : vector<4x32xf32>
    %cst_62 = arith.constant dense<0.000000e+00> : vector<32xf32>
    %104 = vector.multi_reduction <add>, %103, %cst_62 [0] : vector<4x32xf32> to vector<32xf32>
    %105 = vector.shape_cast %104 : vector<32xf32> to vector<1x32xf32>
    %106 = arith.addf %94, %105 : vector<1x32xf32>
    %107 = vector.broadcast %90 : vector<1x32xf32> to vector<4x32xf32>
    %108 = arith.subf %40, %107 : vector<4x32xf32>
    %109 = vector.broadcast %92 : vector<1x32xf32> to vector<4x32xf32>
    %110 = arith.subf %42, %109 : vector<4x32xf32>
    %111 = arith.mulf %108, %108 : vector<4x32xf32>
    %cst_63 = arith.constant dense<0.000000e+00> : vector<32xf32>
    %112 = vector.multi_reduction <add>, %111, %cst_63 [0] : vector<4x32xf32> to vector<32xf32>
    %113 = vector.shape_cast %112 : vector<32xf32> to vector<1x32xf32>
    %114 = arith.addf %102, %113 : vector<1x32xf32>
    %115 = arith.mulf %110, %110 : vector<4x32xf32>
    %cst_64 = arith.constant dense<0.000000e+00> : vector<32xf32>
    %116 = vector.multi_reduction <add>, %115, %cst_64 [0] : vector<4x32xf32> to vector<32xf32>
    %117 = vector.shape_cast %116 : vector<32xf32> to vector<1x32xf32>
    %118 = arith.addf %106, %117 : vector<1x32xf32>
    %119 = vector.broadcast %90 : vector<1x32xf32> to vector<4x32xf32>
    %120 = arith.subf %50, %119 : vector<4x32xf32>
    %121 = vector.broadcast %92 : vector<1x32xf32> to vector<4x32xf32>
    %122 = arith.subf %52, %121 : vector<4x32xf32>
    %123 = arith.mulf %120, %120 : vector<4x32xf32>
    %cst_65 = arith.constant dense<0.000000e+00> : vector<32xf32>
    %124 = vector.multi_reduction <add>, %123, %cst_65 [0] : vector<4x32xf32> to vector<32xf32>
    %125 = vector.shape_cast %124 : vector<32xf32> to vector<1x32xf32>
    %126 = arith.addf %114, %125 : vector<1x32xf32>
    %127 = arith.mulf %122, %122 : vector<4x32xf32>
    %cst_66 = arith.constant dense<0.000000e+00> : vector<32xf32>
    %128 = vector.multi_reduction <add>, %127, %cst_66 [0] : vector<4x32xf32> to vector<32xf32>
    %129 = vector.shape_cast %128 : vector<32xf32> to vector<1x32xf32>
    %130 = arith.addf %118, %129 : vector<1x32xf32>
    %131 = vector.broadcast %90 : vector<1x32xf32> to vector<4x32xf32>
    %132 = arith.subf %60, %131 : vector<4x32xf32>
    %133 = vector.broadcast %92 : vector<1x32xf32> to vector<4x32xf32>
    %134 = arith.subf %62, %133 : vector<4x32xf32>
    %135 = arith.mulf %132, %132 : vector<4x32xf32>
    %cst_67 = arith.constant dense<0.000000e+00> : vector<32xf32>
    %136 = vector.multi_reduction <add>, %135, %cst_67 [0] : vector<4x32xf32> to vector<32xf32>
    %137 = vector.shape_cast %136 : vector<32xf32> to vector<1x32xf32>
    %138 = arith.addf %126, %137 : vector<1x32xf32>
    %139 = arith.mulf %134, %134 : vector<4x32xf32>
    %cst_68 = arith.constant dense<0.000000e+00> : vector<32xf32>
    %140 = vector.multi_reduction <add>, %139, %cst_68 [0] : vector<4x32xf32> to vector<32xf32>
    %141 = vector.shape_cast %140 : vector<32xf32> to vector<1x32xf32>
    %142 = arith.addf %130, %141 : vector<1x32xf32>
    %cst_69 = arith.constant 6.250000e-02 : f32
    %143 = vector.broadcast %cst_69 : f32 to vector<1x32xf32>
    %144 = arith.mulf %138, %143 : vector<1x32xf32>
    %cst_70 = arith.constant 6.250000e-02 : f32
    %145 = vector.broadcast %cst_70 : f32 to vector<1x32xf32>
    %146 = arith.mulf %142, %145 : vector<1x32xf32>
    %cst_71 = arith.constant 9.99999974E-6 : f32
    %147 = vector.broadcast %cst_71 : f32 to vector<1x32xf32>
    %148 = arith.addf %144, %147 : vector<1x32xf32>
    %149 = math.rsqrt %148 : vector<1x32xf32>
    %c0_72 = arith.constant 0 : index
    %c0_73 = arith.constant 0 : index
    %150 = vector.load %arg5[%c0_72, %c0_73] : memref<1x32xf32, #tpu.memory_space<vmem>>, vector<1x32xf32>
    %151 = arith.mulf %149, %150 : vector<1x32xf32>
    %cst_74 = arith.constant 9.99999974E-6 : f32
    %152 = vector.broadcast %cst_74 : f32 to vector<1x32xf32>
    %153 = arith.addf %146, %152 : vector<1x32xf32>
    %154 = math.rsqrt %153 : vector<1x32xf32>
    %c0_75 = arith.constant 0 : index
    %c0_76 = arith.constant 0 : index
    %155 = vector.load %arg7[%c0_75, %c0_76] : memref<1x32xf32, #tpu.memory_space<vmem>>, vector<1x32xf32>
    %156 = arith.mulf %154, %155 : vector<1x32xf32>
    %157 = vector.broadcast %151 : vector<1x32xf32> to vector<4x32xf32>
    %158 = arith.mulf %96, %157 : vector<4x32xf32>
    %c0_77 = arith.constant 0 : index
    %c0_78 = arith.constant 0 : index
    %159 = vector.load %arg6[%c0_77, %c0_78] : memref<1x32xf32, #tpu.memory_space<vmem>>, vector<1x32xf32>
    %160 = vector.broadcast %159 : vector<1x32xf32> to vector<4x32xf32>
    %161 = arith.addf %158, %160 : vector<4x32xf32>
    %162 = vector.broadcast %156 : vector<1x32xf32> to vector<4x32xf32>
    %163 = arith.mulf %98, %162 : vector<4x32xf32>
    %c0_79 = arith.constant 0 : index
    %c0_80 = arith.constant 0 : index
    %164 = vector.load %arg8[%c0_79, %c0_80] : memref<1x32xf32, #tpu.memory_space<vmem>>, vector<1x32xf32>
    %165 = vector.broadcast %164 : vector<1x32xf32> to vector<4x32xf32>
    %166 = arith.addf %163, %165 : vector<4x32xf32>
    %cst_81 = arith.constant 2.000000e+01 : f32
    %167 = vector.broadcast %cst_81 : f32 to vector<4x32xf32>
    %168 = arith.cmpf ogt, %166, %167 : vector<4x32xf32>
    %cst_82 = arith.constant 2.000000e+01 : f32
    %169 = vector.broadcast %cst_82 : f32 to vector<4x32xf32>
    %170 = arith.minimumf %166, %169 : vector<4x32xf32>
    %171 = math.exp %170 : vector<4x32xf32>
    %cst_83 = arith.constant 1.000000e+00 : f32
    %172 = vector.broadcast %cst_83 : f32 to vector<4x32xf32>
    %173 = arith.addf %172, %171 : vector<4x32xf32>
    %174 = math.log %173 : vector<4x32xf32>
    %175 = arith.select %168, %166, %174 : vector<4x32xi1>, vector<4x32xf32>
    %cst_84 = arith.constant 1.000000e-10 : f32
    %176 = vector.broadcast %cst_84 : f32 to vector<4x32xf32>
    %177 = arith.addf %175, %176 : vector<4x32xf32>
    %c0_85 = arith.constant 0 : index
    %c0_86 = arith.constant 0 : index
    %c0_87 = arith.constant 0 : index
    %178 = vector.load %arg9[%c0_85, %c0_86, %c0_87] : memref<4x4x32xf32, #tpu.memory_space<vmem>>, vector<1x4x32xf32>
    %179 = vector.shape_cast %178 : vector<1x4x32xf32> to vector<4x32xf32>
    %c0_88 = arith.constant 0 : index
    %c0_89 = arith.constant 0 : index
    %c0_90 = arith.constant 0 : index
    %180 = vector.load %arg10[%c0_88, %c0_89, %c0_90] : memref<4x4x32xf32, #tpu.memory_space<vmem>>, vector<1x4x32xf32>
    %181 = vector.shape_cast %180 : vector<1x4x32xf32> to vector<4x32xf32>
    %cst_91 = arith.constant 5.000000e-01 : f32
    %182 = vector.broadcast %cst_91 : f32 to vector<4x32xf32>
    %183 = arith.mulf %182, %161 : vector<4x32xf32>
    %184 = arith.mulf %183, %161 : vector<4x32xf32>
    %185 = arith.mulf %161, %177 : vector<4x32xf32>
    %186 = arith.mulf %185, %179 : vector<4x32xf32>
    %187 = arith.addf %184, %186 : vector<4x32xf32>
    %188 = arith.mulf %177, %177 : vector<4x32xf32>
    %cst_92 = arith.constant 1.000000e+00 : f32
    %189 = vector.broadcast %cst_92 : f32 to vector<4x32xf32>
    %190 = arith.subf %188, %189 : vector<4x32xf32>
    %cst_93 = arith.constant 5.000000e-01 : f32
    %191 = vector.broadcast %cst_93 : f32 to vector<4x32xf32>
    %192 = arith.mulf %191, %190 : vector<4x32xf32>
    %193 = arith.mulf %192, %181 : vector<4x32xf32>
    %194 = arith.addf %187, %193 : vector<4x32xf32>
    %195 = math.log %177 : vector<4x32xf32>
    %196 = arith.subf %194, %195 : vector<4x32xf32>
    %cst_94 = arith.constant dense<0.000000e+00> : vector<4xf32>
    %197 = vector.multi_reduction <add>, %196, %cst_94 [1] : vector<4x32xf32> to vector<4xf32>
    %198 = vector.shape_cast %197 : vector<4xf32> to vector<4x1xf32>
    %199 = arith.addf %8, %198 : vector<4x1xf32>
    %200 = vector.broadcast %151 : vector<1x32xf32> to vector<4x32xf32>
    %201 = arith.mulf %108, %200 : vector<4x32xf32>
    %c0_95 = arith.constant 0 : index
    %c0_96 = arith.constant 0 : index
    %202 = vector.load %arg6[%c0_95, %c0_96] : memref<1x32xf32, #tpu.memory_space<vmem>>, vector<1x32xf32>
    %203 = vector.broadcast %202 : vector<1x32xf32> to vector<4x32xf32>
    %204 = arith.addf %201, %203 : vector<4x32xf32>
    %205 = vector.broadcast %156 : vector<1x32xf32> to vector<4x32xf32>
    %206 = arith.mulf %110, %205 : vector<4x32xf32>
    %c0_97 = arith.constant 0 : index
    %c0_98 = arith.constant 0 : index
    %207 = vector.load %arg8[%c0_97, %c0_98] : memref<1x32xf32, #tpu.memory_space<vmem>>, vector<1x32xf32>
    %208 = vector.broadcast %207 : vector<1x32xf32> to vector<4x32xf32>
    %209 = arith.addf %206, %208 : vector<4x32xf32>
    %cst_99 = arith.constant 2.000000e+01 : f32
    %210 = vector.broadcast %cst_99 : f32 to vector<4x32xf32>
    %211 = arith.cmpf ogt, %209, %210 : vector<4x32xf32>
    %cst_100 = arith.constant 2.000000e+01 : f32
    %212 = vector.broadcast %cst_100 : f32 to vector<4x32xf32>
    %213 = arith.minimumf %209, %212 : vector<4x32xf32>
    %214 = math.exp %213 : vector<4x32xf32>
    %cst_101 = arith.constant 1.000000e+00 : f32
    %215 = vector.broadcast %cst_101 : f32 to vector<4x32xf32>
    %216 = arith.addf %215, %214 : vector<4x32xf32>
    %217 = math.log %216 : vector<4x32xf32>
    %218 = arith.select %211, %209, %217 : vector<4x32xi1>, vector<4x32xf32>
    %cst_102 = arith.constant 1.000000e-10 : f32
    %219 = vector.broadcast %cst_102 : f32 to vector<4x32xf32>
    %220 = arith.addf %218, %219 : vector<4x32xf32>
    %c1_103 = arith.constant 1 : index
    %c0_104 = arith.constant 0 : index
    %c0_105 = arith.constant 0 : index
    %221 = vector.load %arg9[%c1_103, %c0_104, %c0_105] : memref<4x4x32xf32, #tpu.memory_space<vmem>>, vector<1x4x32xf32>
    %222 = vector.shape_cast %221 : vector<1x4x32xf32> to vector<4x32xf32>
    %c1_106 = arith.constant 1 : index
    %c0_107 = arith.constant 0 : index
    %c0_108 = arith.constant 0 : index
    %223 = vector.load %arg10[%c1_106, %c0_107, %c0_108] : memref<4x4x32xf32, #tpu.memory_space<vmem>>, vector<1x4x32xf32>
    %224 = vector.shape_cast %223 : vector<1x4x32xf32> to vector<4x32xf32>
    %cst_109 = arith.constant 5.000000e-01 : f32
    %225 = vector.broadcast %cst_109 : f32 to vector<4x32xf32>
    %226 = arith.mulf %225, %204 : vector<4x32xf32>
    %227 = arith.mulf %226, %204 : vector<4x32xf32>
    %228 = arith.mulf %204, %220 : vector<4x32xf32>
    %229 = arith.mulf %228, %222 : vector<4x32xf32>
    %230 = arith.addf %227, %229 : vector<4x32xf32>
    %231 = arith.mulf %220, %220 : vector<4x32xf32>
    %cst_110 = arith.constant 1.000000e+00 : f32
    %232 = vector.broadcast %cst_110 : f32 to vector<4x32xf32>
    %233 = arith.subf %231, %232 : vector<4x32xf32>
    %cst_111 = arith.constant 5.000000e-01 : f32
    %234 = vector.broadcast %cst_111 : f32 to vector<4x32xf32>
    %235 = arith.mulf %234, %233 : vector<4x32xf32>
    %236 = arith.mulf %235, %224 : vector<4x32xf32>
    %237 = arith.addf %230, %236 : vector<4x32xf32>
    %238 = math.log %220 : vector<4x32xf32>
    %239 = arith.subf %237, %238 : vector<4x32xf32>
    %cst_112 = arith.constant dense<0.000000e+00> : vector<4xf32>
    %240 = vector.multi_reduction <add>, %239, %cst_112 [1] : vector<4x32xf32> to vector<4xf32>
    %241 = vector.shape_cast %240 : vector<4xf32> to vector<4x1xf32>
    %242 = arith.addf %199, %241 : vector<4x1xf32>
    %243 = vector.broadcast %151 : vector<1x32xf32> to vector<4x32xf32>
    %244 = arith.mulf %120, %243 : vector<4x32xf32>
    %c0_113 = arith.constant 0 : index
    %c0_114 = arith.constant 0 : index
    %245 = vector.load %arg6[%c0_113, %c0_114] : memref<1x32xf32, #tpu.memory_space<vmem>>, vector<1x32xf32>
    %246 = vector.broadcast %245 : vector<1x32xf32> to vector<4x32xf32>
    %247 = arith.addf %244, %246 : vector<4x32xf32>
    %248 = vector.broadcast %156 : vector<1x32xf32> to vector<4x32xf32>
    %249 = arith.mulf %122, %248 : vector<4x32xf32>
    %c0_115 = arith.constant 0 : index
    %c0_116 = arith.constant 0 : index
    %250 = vector.load %arg8[%c0_115, %c0_116] : memref<1x32xf32, #tpu.memory_space<vmem>>, vector<1x32xf32>
    %251 = vector.broadcast %250 : vector<1x32xf32> to vector<4x32xf32>
    %252 = arith.addf %249, %251 : vector<4x32xf32>
    %cst_117 = arith.constant 2.000000e+01 : f32
    %253 = vector.broadcast %cst_117 : f32 to vector<4x32xf32>
    %254 = arith.cmpf ogt, %252, %253 : vector<4x32xf32>
    %cst_118 = arith.constant 2.000000e+01 : f32
    %255 = vector.broadcast %cst_118 : f32 to vector<4x32xf32>
    %256 = arith.minimumf %252, %255 : vector<4x32xf32>
    %257 = math.exp %256 : vector<4x32xf32>
    %cst_119 = arith.constant 1.000000e+00 : f32
    %258 = vector.broadcast %cst_119 : f32 to vector<4x32xf32>
    %259 = arith.addf %258, %257 : vector<4x32xf32>
    %260 = math.log %259 : vector<4x32xf32>
    %261 = arith.select %254, %252, %260 : vector<4x32xi1>, vector<4x32xf32>
    %cst_120 = arith.constant 1.000000e-10 : f32
    %262 = vector.broadcast %cst_120 : f32 to vector<4x32xf32>
    %263 = arith.addf %261, %262 : vector<4x32xf32>
    %c2_121 = arith.constant 2 : index
    %c0_122 = arith.constant 0 : index
    %c0_123 = arith.constant 0 : index
    %264 = vector.load %arg9[%c2_121, %c0_122, %c0_123] : memref<4x4x32xf32, #tpu.memory_space<vmem>>, vector<1x4x32xf32>
    %265 = vector.shape_cast %264 : vector<1x4x32xf32> to vector<4x32xf32>
    %c2_124 = arith.constant 2 : index
    %c0_125 = arith.constant 0 : index
    %c0_126 = arith.constant 0 : index
    %266 = vector.load %arg10[%c2_124, %c0_125, %c0_126] : memref<4x4x32xf32, #tpu.memory_space<vmem>>, vector<1x4x32xf32>
    %267 = vector.shape_cast %266 : vector<1x4x32xf32> to vector<4x32xf32>
    %cst_127 = arith.constant 5.000000e-01 : f32
    %268 = vector.broadcast %cst_127 : f32 to vector<4x32xf32>
    %269 = arith.mulf %268, %247 : vector<4x32xf32>
    %270 = arith.mulf %269, %247 : vector<4x32xf32>
    %271 = arith.mulf %247, %263 : vector<4x32xf32>
    %272 = arith.mulf %271, %265 : vector<4x32xf32>
    %273 = arith.addf %270, %272 : vector<4x32xf32>
    %274 = arith.mulf %263, %263 : vector<4x32xf32>
    %cst_128 = arith.constant 1.000000e+00 : f32
    %275 = vector.broadcast %cst_128 : f32 to vector<4x32xf32>
    %276 = arith.subf %274, %275 : vector<4x32xf32>
    %cst_129 = arith.constant 5.000000e-01 : f32
    %277 = vector.broadcast %cst_129 : f32 to vector<4x32xf32>
    %278 = arith.mulf %277, %276 : vector<4x32xf32>
    %279 = arith.mulf %278, %267 : vector<4x32xf32>
    %280 = arith.addf %273, %279 : vector<4x32xf32>
    %281 = math.log %263 : vector<4x32xf32>
    %282 = arith.subf %280, %281 : vector<4x32xf32>
    %cst_130 = arith.constant dense<0.000000e+00> : vector<4xf32>
    %283 = vector.multi_reduction <add>, %282, %cst_130 [1] : vector<4x32xf32> to vector<4xf32>
    %284 = vector.shape_cast %283 : vector<4xf32> to vector<4x1xf32>
    %285 = arith.addf %242, %284 : vector<4x1xf32>
    %286 = vector.broadcast %151 : vector<1x32xf32> to vector<4x32xf32>
    %287 = arith.mulf %132, %286 : vector<4x32xf32>
    %c0_131 = arith.constant 0 : index
    %c0_132 = arith.constant 0 : index
    %288 = vector.load %arg6[%c0_131, %c0_132] : memref<1x32xf32, #tpu.memory_space<vmem>>, vector<1x32xf32>
    %289 = vector.broadcast %288 : vector<1x32xf32> to vector<4x32xf32>
    %290 = arith.addf %287, %289 : vector<4x32xf32>
    %291 = vector.broadcast %156 : vector<1x32xf32> to vector<4x32xf32>
    %292 = arith.mulf %134, %291 : vector<4x32xf32>
    %c0_133 = arith.constant 0 : index
    %c0_134 = arith.constant 0 : index
    %293 = vector.load %arg8[%c0_133, %c0_134] : memref<1x32xf32, #tpu.memory_space<vmem>>, vector<1x32xf32>
    %294 = vector.broadcast %293 : vector<1x32xf32> to vector<4x32xf32>
    %295 = arith.addf %292, %294 : vector<4x32xf32>
    %cst_135 = arith.constant 2.000000e+01 : f32
    %296 = vector.broadcast %cst_135 : f32 to vector<4x32xf32>
    %297 = arith.cmpf ogt, %295, %296 : vector<4x32xf32>
    %cst_136 = arith.constant 2.000000e+01 : f32
    %298 = vector.broadcast %cst_136 : f32 to vector<4x32xf32>
    %299 = arith.minimumf %295, %298 : vector<4x32xf32>
    %300 = math.exp %299 : vector<4x32xf32>
    %cst_137 = arith.constant 1.000000e+00 : f32
    %301 = vector.broadcast %cst_137 : f32 to vector<4x32xf32>
    %302 = arith.addf %301, %300 : vector<4x32xf32>
    %303 = math.log %302 : vector<4x32xf32>
    %304 = arith.select %297, %295, %303 : vector<4x32xi1>, vector<4x32xf32>
    %cst_138 = arith.constant 1.000000e-10 : f32
    %305 = vector.broadcast %cst_138 : f32 to vector<4x32xf32>
    %306 = arith.addf %304, %305 : vector<4x32xf32>
    %c3_139 = arith.constant 3 : index
    %c0_140 = arith.constant 0 : index
    %c0_141 = arith.constant 0 : index
    %307 = vector.load %arg9[%c3_139, %c0_140, %c0_141] : memref<4x4x32xf32, #tpu.memory_space<vmem>>, vector<1x4x32xf32>
    %308 = vector.shape_cast %307 : vector<1x4x32xf32> to vector<4x32xf32>
    %c3_142 = arith.constant 3 : index
    %c0_143 = arith.constant 0 : index
    %c0_144 = arith.constant 0 : index
    %309 = vector.load %arg10[%c3_142, %c0_143, %c0_144] : memref<4x4x32xf32, #tpu.memory_space<vmem>>, vector<1x4x32xf32>
    %310 = vector.shape_cast %309 : vector<1x4x32xf32> to vector<4x32xf32>
    %cst_145 = arith.constant 5.000000e-01 : f32
    %311 = vector.broadcast %cst_145 : f32 to vector<4x32xf32>
    %312 = arith.mulf %311, %290 : vector<4x32xf32>
    %313 = arith.mulf %312, %290 : vector<4x32xf32>
    %314 = arith.mulf %290, %306 : vector<4x32xf32>
    %315 = arith.mulf %314, %308 : vector<4x32xf32>
    %316 = arith.addf %313, %315 : vector<4x32xf32>
    %317 = arith.mulf %306, %306 : vector<4x32xf32>
    %cst_146 = arith.constant 1.000000e+00 : f32
    %318 = vector.broadcast %cst_146 : f32 to vector<4x32xf32>
    %319 = arith.subf %317, %318 : vector<4x32xf32>
    %cst_147 = arith.constant 5.000000e-01 : f32
    %320 = vector.broadcast %cst_147 : f32 to vector<4x32xf32>
    %321 = arith.mulf %320, %319 : vector<4x32xf32>
    %322 = arith.mulf %321, %310 : vector<4x32xf32>
    %323 = arith.addf %316, %322 : vector<4x32xf32>
    %324 = math.log %306 : vector<4x32xf32>
    %325 = arith.subf %323, %324 : vector<4x32xf32>
    %cst_148 = arith.constant dense<0.000000e+00> : vector<4xf32>
    %326 = vector.multi_reduction <add>, %325, %cst_148 [1] : vector<4x32xf32> to vector<4xf32>
    %327 = vector.shape_cast %326 : vector<4xf32> to vector<4x1xf32>
    %328 = arith.addf %285, %327 : vector<4x1xf32>
    %329 = arith.addf %161, %204 : vector<4x32xf32>
    %330 = arith.addf %329, %247 : vector<4x32xf32>
    %331 = arith.addf %330, %290 : vector<4x32xf32>
    %cst_149 = arith.constant 2.500000e-01 : f32
    %332 = vector.broadcast %cst_149 : f32 to vector<4x32xf32>
    %333 = arith.mulf %331, %332 : vector<4x32xf32>
    %334 = arith.truncf %333 : vector<4x32xf32> to vector<4x32xbf16>
    %c0_150 = arith.constant 0 : index
    %c0_151 = arith.constant 0 : index
    %335 = vector.load %arg12[%c0_150, %c0_151] : memref<32x8xbf16, #tpu.memory_space<vmem>>, vector<32x8xbf16>
    %cst_152 = arith.constant dense<0.000000e+00> : vector<4x8xf32>
    %336 = tpu.matmul %334, %335, %cst_152 {dimension_numbers = #tpu.dot_dimension_numbers<[1], [0], [0], [1], [0, 0, 1, 1], [], []>} : vector<4x32xbf16>, vector<32x8xbf16>, vector<4x8xf32> -> vector<4x8xf32>
    %337 = arith.truncf %161 : vector<4x32xf32> to vector<4x32xbf16>
    %c0_153 = arith.constant 0 : index
    %c0_154 = arith.constant 0 : index
    %338 = vector.load %arg11[%c0_153, %c0_154] : memref<32x8xbf16, #tpu.memory_space<vmem>>, vector<32x8xbf16>
    %cst_155 = arith.constant dense<0.000000e+00> : vector<4x8xf32>
    %339 = tpu.matmul %337, %338, %cst_155 {dimension_numbers = #tpu.dot_dimension_numbers<[1], [0], [0], [1], [0, 0, 1, 1], [], []>} : vector<4x32xbf16>, vector<32x8xbf16>, vector<4x8xf32> -> vector<4x8xf32>
    %340 = arith.addf %339, %336 : vector<4x8xf32>
    %c0_156 = arith.constant 0 : index
    %c0_157 = arith.constant 0 : index
    %c0_158 = arith.constant 0 : index
    %341 = vector.load %arg13[%c0_156, %c0_157, %c0_158] : memref<4x4x8xf32, #tpu.memory_space<vmem>>, vector<1x4x8xf32>
    %342 = vector.shape_cast %341 : vector<1x4x8xf32> to vector<4x8xf32>
    %343 = vector.shape_cast %340 : vector<4x8xf32> to vector<1x4x8xf32>
    tpu.vector_store %arg13[%c0_156, %c0_157, %c0_158], %343 {strides = array<i32>} : memref<4x4x8xf32, #tpu.memory_space<vmem>>, vector<1x4x8xf32>,
    %344 = arith.truncf %204 : vector<4x32xf32> to vector<4x32xbf16>
    %c0_159 = arith.constant 0 : index
    %c0_160 = arith.constant 0 : index
    %345 = vector.load %arg11[%c0_159, %c0_160] : memref<32x8xbf16, #tpu.memory_space<vmem>>, vector<32x8xbf16>
    %cst_161 = arith.constant dense<0.000000e+00> : vector<4x8xf32>
    %346 = tpu.matmul %344, %345, %cst_161 {dimension_numbers = #tpu.dot_dimension_numbers<[1], [0], [0], [1], [0, 0, 1, 1], [], []>} : vector<4x32xbf16>, vector<32x8xbf16>, vector<4x8xf32> -> vector<4x8xf32>
    %347 = arith.addf %346, %336 : vector<4x8xf32>
    %c1_162 = arith.constant 1 : index
    %c0_163 = arith.constant 0 : index
    %c0_164 = arith.constant 0 : index
    %348 = vector.load %arg13[%c1_162, %c0_163, %c0_164] : memref<4x4x8xf32, #tpu.memory_space<vmem>>, vector<1x4x8xf32>
    %349 = vector.shape_cast %348 : vector<1x4x8xf32> to vector<4x8xf32>
    %350 = vector.shape_cast %347 : vector<4x8xf32> to vector<1x4x8xf32>
    tpu.vector_store %arg13[%c1_162, %c0_163, %c0_164], %350 {strides = array<i32>} : memref<4x4x8xf32, #tpu.memory_space<vmem>>, vector<1x4x8xf32>,
    %351 = arith.truncf %247 : vector<4x32xf32> to vector<4x32xbf16>
    %c0_165 = arith.constant 0 : index
    %c0_166 = arith.constant 0 : index
    %352 = vector.load %arg11[%c0_165, %c0_166] : memref<32x8xbf16, #tpu.memory_space<vmem>>, vector<32x8xbf16>
    %cst_167 = arith.constant dense<0.000000e+00> : vector<4x8xf32>
    %353 = tpu.matmul %351, %352, %cst_167 {dimension_numbers = #tpu.dot_dimension_numbers<[1], [0], [0], [1], [0, 0, 1, 1], [], []>} : vector<4x32xbf16>, vector<32x8xbf16>, vector<4x8xf32> -> vector<4x8xf32>
    %354 = arith.addf %353, %336 : vector<4x8xf32>
    %c2_168 = arith.constant 2 : index
    %c0_169 = arith.constant 0 : index
    %c0_170 = arith.constant 0 : index
    %355 = vector.load %arg13[%c2_168, %c0_169, %c0_170] : memref<4x4x8xf32, #tpu.memory_space<vmem>>, vector<1x4x8xf32>
    %356 = vector.shape_cast %355 : vector<1x4x8xf32> to vector<4x8xf32>
    %357 = vector.shape_cast %354 : vector<4x8xf32> to vector<1x4x8xf32>
    tpu.vector_store %arg13[%c2_168, %c0_169, %c0_170], %357 {strides = array<i32>} : memref<4x4x8xf32, #tpu.memory_space<vmem>>, vector<1x4x8xf32>,
    %358 = arith.truncf %290 : vector<4x32xf32> to vector<4x32xbf16>
    %c0_171 = arith.constant 0 : index
    %c0_172 = arith.constant 0 : index
    %359 = vector.load %arg11[%c0_171, %c0_172] : memref<32x8xbf16, #tpu.memory_space<vmem>>, vector<32x8xbf16>
    %cst_173 = arith.constant dense<0.000000e+00> : vector<4x8xf32>
    %360 = tpu.matmul %358, %359, %cst_173 {dimension_numbers = #tpu.dot_dimension_numbers<[1], [0], [0], [1], [0, 0, 1, 1], [], []>} : vector<4x32xbf16>, vector<32x8xbf16>, vector<4x8xf32> -> vector<4x8xf32>
    %361 = arith.addf %360, %336 : vector<4x8xf32>
    %c3_174 = arith.constant 3 : index
    %c0_175 = arith.constant 0 : index
    %c0_176 = arith.constant 0 : index
    %362 = vector.load %arg13[%c3_174, %c0_175, %c0_176] : memref<4x4x8xf32, #tpu.memory_space<vmem>>, vector<1x4x8xf32>
    %363 = vector.shape_cast %362 : vector<1x4x8xf32> to vector<4x8xf32>
    %364 = vector.shape_cast %361 : vector<4x8xf32> to vector<1x4x8xf32>
    tpu.vector_store %arg13[%c3_174, %c0_175, %c0_176], %364 {strides = array<i32>} : memref<4x4x8xf32, #tpu.memory_space<vmem>>, vector<1x4x8xf32>,
    %c0_177 = arith.constant 0 : index
    %c0_178 = arith.constant 0 : index
    %365 = vector.load %arg14[%c0_177, %c0_178] : memref<4x1xf32, #tpu.memory_space<vmem>>, vector<4x1xf32>
    tpu.vector_store %arg14[%c0_177, %c0_178], %328 {strides = array<i32>} : memref<4x1xf32, #tpu.memory_space<vmem>>, vector<4x1xf32>,
    return
  }
}

</mosaic_0001>

<bundles_post_ra>
// kernel: tpu_custom_call.1
= control target key start
LH: loop header
LB: loop body
LE: loop exit
PB: predicated region body
PF: predicated region fallthrough
CT: control target
= control target key end

     0   :  { %20 = vsyncpa [#allocation3], 0  ;;  %s1512_s0 = inlined_call_operand.hbm [shape: bf16[4,4,32], index: 0, kind: input, shape index: {}]   ;;  %s1513_s1 = inlined_call_operand.vmem [shape: bf16[32,32], index: 1, kind: input, shape index: {}]   ;;  %s1514_s2 = inlined_call_operand.vmem [shape: bf16[32,32], index: 2, kind: input, shape index: {}]   ;;  %s1515_s3 = inlined_call_operand.hbm [shape: bf16[32,32], index: 3, kind: input, shape index: {}]   ;;  %s1516_s4 = inlined_call_operand.hbm [shape: bf16[32,32], index: 4, kind: input, shape index: {}]   ;;  %s1517_s5 = inlined_call_operand.vmem [shape: f32[1,32], index: 5, kind: input, shape index: {}]   ;;  %s1518_s6 = inlined_call_operand.vmem [shape: f32[1,32], index: 6, kind: input, shape index: {}]   ;;  %s1519_s7 = inlined_call_operand.vmem [shape: f32[1,32], index: 7, kind: input, shape index: {}]   ;;  %s1520_s8 = inlined_call_operand.vmem [shape: f32[1,32], index: 8, kind: input, shape index: {}]   ;;  %s1521_s9 = inlined_call_operand.hbm [shape: f32[4,4,32], index: 9, kind: input, shape index: {}]   ;;  %s1522_s10 = inlined_call_operand.hbm [shape: f32[4,4,32], index: 10, kind: input, shape index: {}]   ;;  %s1523_s11 = inlined_call_operand.vmem [shape: bf16[32,8], index: 11, kind: input, shape index: {}]   ;;  %s1524_s12 = inlined_call_operand.vmem [shape: bf16[32,8], index: 12, kind: input, shape index: {}]   ;;  %s1525_s13 = inlined_call_operand.hbm [shape: f32[4,4,8], index: 13, kind: output, shape index: {0}]   ;;  %s1526_s14 = inlined_call_operand.vmem [shape: f32[4,1], index: 14, kind: output, shape index: {1}]  }
   0x1   :  { %21 = vsyncpa [#allocation6], 0 }
   0x2   :  { %22 = vsyncpa [#allocation9], 0  ;;  %s45_s15 = sshll.u32 %s1515_s3, 4  ;;  %s46_s15 = int_to_ptr.hbm [resolvable:$true] %s45_s15 }
   0x3   :  { %23 = vsyncpa [#allocation4], 0  ;;  %s1184_s16 = smov [#allocation5]   ;;  %s79_s20 = sshll.u32 %s1521_s9, 4  ;;  %s80_s20 = int_to_ptr.hbm [resolvable:$true] %s79_s20 }
   0x4   :  { %s47_s17 = sshll.u32 %s1184_s16, 4  ;;  %s1185_s21 = smov 64   ;;  %s48_s17 = int_to_ptr.vmem [resolvable:$true] %s47_s17 }
   0x5   :  { %s1186_s22 = smov 4   ;;  %s1187_s23 = smov [#allocation8]  }
   0x6   :  { %53 = dma.hbm_to_vmem [thread:$0]  %s46_s15, 256, %s48_s17, [#allocation6], %s1185_s21, %s1185_s21, %s1186_s22  }
   0x7   :  { %s81_s24 = sshll.u32 %s1187_s23, 4  ;;  %s28_s26 = sshll.u32 %s1512_s0, 4  ;;  %s82_s24 = int_to_ptr.vmem [resolvable:$true] %s81_s24  ;;  %s29_s26 = int_to_ptr.hbm [resolvable:$true] %s28_s26 }
   0x8   :  { %87 = dma.hbm_to_vmem [thread:$0]  %s80_s20, 256, %s82_s24, [#allocation9], %s1185_s21, %s1185_s21, %s1186_s22  }
   0x9   :  { %s1188_s9 = smov [#allocation2]   ;;  %s58_s30 = sshll.u32 %s1516_s4, 4  ;;  %s59_s30 = int_to_ptr.hbm [resolvable:$true] %s58_s30 }
   0xa   :  { %s30_s27 = sshll.u32 %s1188_s9, 4  ;;  %s1189_s15 = smov 32   ;;  %s31_s27 = int_to_ptr.vmem [resolvable:$true] %s30_s27 }
   0xb   :  { %s1190_s16 = smov 2   ;;  %s1191_s17 = smov [#allocation7]  }
   0xc   :  { %36 = dma.hbm_to_vmem [thread:$0]  %s29_s26, 128, %s31_s27, [#allocation3], %s1189_s15, %s1189_s15, %s1190_s16  }
   0xd   :  { %s60_s18 = sshll.u32 %s1191_s17, 4  ;;  %s92_s23 = sshll.u32 %s1522_s10, 4  ;;  %s61_s18 = int_to_ptr.vmem [resolvable:$true] %s60_s18  ;;  %s93_s23 = int_to_ptr.hbm [resolvable:$true] %s92_s23 }
   0xe   :  { %66 = dma.hbm_to_vmem [thread:$0]  %s59_s30, 256, %s61_s18, [#allocation6], %s1185_s21, %s1185_s21, %s1186_s22  }
   0xf   :  { %s1192_s20 = smov [#allocation10]  }
  0x10   :  { %s94_s24 = sshll.u32 %s1192_s20, 4  ;;  %s95_s24 = int_to_ptr.vmem [resolvable:$true] %s94_s24 }
  0x11   :  { %100 = dma.hbm_to_vmem [thread:$0]  %s93_s23, 256, %s95_s24, [#allocation9], %s1185_s21, %s1185_s21, %s1186_s22  }
  0x12   :  { %1176 = dma.done.wait [#allocation3], 128  }
  0x13   :  { %1177 = vsyncadd [#allocation3], 4294967168 }
  0x14   :  { %1178 = dma.done.wait [#allocation6], 512  }
  0x15   :  { %1179 = vsyncadd [#allocation6], 4294966784 }
  0x16   :  { %1180 = dma.done.wait [#allocation9], 512  }
  0x17   :  { %1181 = vsyncadd [#allocation9], 4294966784  ;;  %v979_v0 = vld [vmem:[%s1513_s1 + $0x8] sm:$0xff]  ;;  %v975_v2 = vld [vmem:[#allocation5 + $0x8] sm:$0xff]  ;;  %vm158_vm0 = vcmask 261120   ;;  %vm360_vm1 = vcmask 257024  }
  0x18   :  { %v981_v1 = vld [vmem:[%s1514_s2 + $0x8] sm:$0xff]  ;;  %v977_v3 = vld [vmem:[#allocation7 + $0x8] sm:$0xff]  ;;  %229 = vmatpush.bf16.msra.mxu2 %v979_v0  ;;  %v976_v7 = vld [vmem:[#allocation7] sm:$0xff]  ;;  %168 = vmatpush.bf16.msra.mxu0 %v975_v2  ;;  %vm749_vm12 = vcmask 60416   ;;  %s864_s16 = sshll.u32 %s1525_s13, 4  ;;  %vm856_vm13 = vcmask 3072   ;;  %s865_s16 = int_to_ptr.hbm [resolvable:$true] %s864_s16 }
  0x19   :  { %v978_v4 = vld [vmem:[%s1513_s1] sm:$0xff]  ;;  %258 = vmatpush.bf16.msra.mxu3 %v981_v1  ;;  %v974_v6 = vld [vmem:[#allocation5] sm:$0xff]  ;;  %197 = vmatpush.bf16.msra.mxu1 %v977_v3 }
  0x1a   :  { %v980_v5 = vld [vmem:[%s1514_s2] sm:$0xff] }
  0x1b   :  { %v126_v8 = vld [vmem:[#allocation2] sm:$0x3]  ;;  %v128_v9 = vld [vmem:[#allocation2 + $0x2] sm:$0x3]  ;;  %v130_v11 = vld [vmem:[#allocation2 + $0x4] sm:$0x3] }
  0x1c   :  { %v133_v10 = vunpack.c.l.bf16 %v126_v8  ;;  %v132_v12 = vld [vmem:[#allocation2 + $0x6] sm:$0x3]  ;;  %v134_v13 = vunpack.c.l.bf16 %v128_v9  ;;  %v136_v14 = vunpack.c.l.bf16 %v130_v11  ;;  %230 = vmatpush.bf16.msra.mxu2 %v978_v4  ;;  %169 = vmatpush.bf16.msra.mxu0 %v974_v6 }
  0x1d   :  { %259 = vmatpush.bf16.msra.mxu3 %v980_v5  ;;  %v138_v16 = vunpack.c.l.bf16 %v132_v12  ;;  %198 = vmatpush.bf16.msra.mxu1 %v976_v7 }
  0x1e   :  { %v135_v15 = vadd.f32 %v134_v13, %v133_v10 }
  0x1f   :  { %909 = vmatmul.msk.bf16.vlgmr.msra.gmra.mxu2 %vm158_vm0, %v126_v8 }
  0x20   :  { %v137_v17 = vadd.f32 %v136_v14, %v135_v15  ;;  %276 = vmatpush.bf16.msrb.mxu0 %v979_v0  ;;  %918 = vmatmul.msk.bf16.vlgmr.msra.gmra.mxu3 %vm158_vm0, %v126_v8 }
  0x21   :  { %289 = vmatpush.bf16.msrb.mxu1 %v981_v1  ;;  %307 = vmatpush.bf16.msrb.mxu2 %v979_v0 }
  0x22   :  { %v139_v18 = vadd.f32 %v138_v16, %v137_v17  ;;  %320 = vmatpush.bf16.msrb.mxu3 %v981_v1 }
  0x24   :  { %v140_v19 = vmul.f32 0.25, %v139_v18  ;;  %277 = vmatpush.bf16.msrb.mxu0 %v978_v4 }
  0x25   :  { %290 = vmatpush.bf16.msrb.mxu1 %v980_v5  ;;  %308 = vmatpush.bf16.msrb.mxu2 %v978_v4 }
  0x26   :  { %v141_v20 = vpack.c.bf16 %v140_v19, %v140_v19  ;;  %321 = vmatpush.bf16.msrb.mxu3 %v980_v5 }
  0x28   :  { %891 = vmatmul.msk.bf16.vlgmr.msra.gmra.mxu0 %vm158_vm0, %v141_v20  ;;  %900 = vmatmul.msk.bf16.vlgmr.msra.gmra.mxu1 %vm158_vm0, %v141_v20 }
  0x29   :  { %351 = vmatpush.bf16.msra.mxu1 %v981_v1  ;;  %338 = vmatpush.bf16.msra.mxu0 %v979_v0 }
  0x2d   :  { %352 = vmatpush.bf16.msra.mxu1 %v980_v5  ;;  %339 = vmatpush.bf16.msra.mxu0 %v978_v4 }
  0x2f   :  { %921 = vmatmul.msk.bf16.vlgmr.msrb.gmra.mxu2 %vm158_vm0, %v130_v11 }
  0x30   :  { %922 = vmatmul.msk.bf16.vlgmr.msrb.gmra.mxu3 %vm158_vm0, %v130_v11 }
  0x38   :  { %919 = vmatmul.msk.bf16.vlgmr.msrb.gmra.mxu0 %vm158_vm0, %v128_v9  ;;  %920 = vmatmul.msk.bf16.vlgmr.msrb.gmra.mxu1 %vm158_vm0, %v128_v9 }
  0x48   :  { %923 = vmatmul.msk.bf16.vlgmr.msra.gmra.mxu0 %vm158_vm0, %v132_v12  ;;  %924 = vmatmul.msk.bf16.vlgmr.msra.gmra.mxu1 %vm158_vm0, %v132_v12 }
  0xa2   :  { %v232_v21 = vpop.f32.mrf.mxu2 }
  0xa3   :  { %v261_v22 = vpop.f32.mrf.mxu3 }
  0xa5   :  { %v171_v23 = vpop.f32.mrf.mxu0  ;;  %v200_v24 = vpop.f32.mrf.mxu1 }
  0xa6   :  { %v1318_v29 = vadd.f32 %v232_v21, %v171_v23  ;;  %v1320_v30 = vadd.f32 %v261_v22, %v200_v24 }
  0xa8   :  { %v265_v31 = vmax.f32 %v1318_v29, 0.0  ;;  %v266_v32 = vmax.f32 %v1320_v30, 0.0 }
  0xaa   :  { %v234_v25 = vpop.f32.mrf.mxu2  ;;  %v361_v43 = vsel %vm360_vm1, %v265_v31, 0.0  ;;  %v369_v44 = vsel %vm360_vm1, %v266_v32, 0.0 }
  0xab   :  { %v263_v26 = vpop.f32.mrf.mxu3  ;;  %v362_v51 = vrot.slane %v361_v43, 4  ;;  %v370_v52 = vrot.slane %v369_v44, 4 }
  0xad   :  { %v173_v27 = vpop.f32.mrf.mxu0  ;;  %v202_v28 = vpop.f32.mrf.mxu1  ;;  %v363_v63 = vadd.f32 %v362_v51, %v361_v43  ;;  %v371_v0 = vadd.f32 %v370_v52, %v369_v44 }
  0xaf   :  { %v364_v5 = vrot.slane %v363_v63, 2  ;;  %v372_v6 = vrot.slane %v371_v0, 2 }
  0xb1   :  { %v365_v15 = vadd.f32 %v364_v5, %v363_v63  ;;  %v373_v16 = vadd.f32 %v372_v6, %v371_v0 }
  0xb2   :  { %v310_v33 = vpop.f32.mrf.mxu2 }
  0xb3   :  { %v323_v34 = vpop.f32.mrf.mxu3  ;;  %v1324_v37 = vadd.f32 %v310_v33, %v171_v23  ;;  %v366_v27 = vrot.slane %v365_v15, 1  ;;  %v374_v28 = vrot.slane %v373_v16, 1 }
  0xb4   :  { %v1326_v38 = vadd.f32 %v323_v34, %v200_v24 }
  0xb5   :  { %v279_v35 = vpop.f32.mrf.mxu0  ;;  %v292_v36 = vpop.f32.mrf.mxu1  ;;  %v327_v41 = vmax.f32 %v1324_v37, 0.0 }
  0xb6   :  { %v1328_v39 = vadd.f32 %v279_v35, %v171_v23  ;;  %v1330_v40 = vadd.f32 %v292_v36, %v200_v24  ;;  %v328_v42 = vmax.f32 %v1326_v38, 0.0 }
  0xb7   :  { %v393_v47 = vsel %vm360_vm1, %v327_v41, 0.0 }
  0xb8   :  { %v296_v45 = vmax.f32 %v1328_v39, 0.0  ;;  %v297_v46 = vmax.f32 %v1330_v40, 0.0  ;;  %v401_v48 = vsel %vm360_vm1, %v328_v42, 0.0  ;;  %v394_v55 = vrot.slane %v393_v47, 4 }
  0xb9   :  { %v402_v56 = vrot.slane %v401_v48, 4 }
  0xba   :  { %v377_v49 = vsel %vm360_vm1, %v296_v45, 0.0  ;;  %v385_v50 = vsel %vm360_vm1, %v297_v46, 0.0  ;;  %v312_v58 = vpop.f32.mrf.mxu2  ;;  %v395_v1 = vadd.f32 %v394_v55, %v393_v47 }
  0xbb   :  { %v378_v53 = vrot.slane %v377_v49, 4  ;;  %v386_v54 = vrot.slane %v385_v50, 4  ;;  %v325_v57 = vpop.f32.mrf.mxu3  ;;  %v403_v2 = vadd.f32 %v402_v56, %v401_v48 }
  0xbc   :  { %v396_v7 = vrot.slane %v395_v1, 2 }
  0xbd   :  { %v379_v59 = vadd.f32 %v378_v53, %v377_v49  ;;  %v387_v60 = vadd.f32 %v386_v54, %v385_v50  ;;  %v281_v61 = vpop.f32.mrf.mxu0  ;;  %v294_v62 = vpop.f32.mrf.mxu1  ;;  %v404_v8 = vrot.slane %v403_v2, 2  ;;  %v367_v49 = vadd.f32 %v366_v27, %v365_v15 }
  0xbe   :  { %v397_v17 = vadd.f32 %v396_v7, %v395_v1  ;;  %v375_v50 = vadd.f32 %v374_v28, %v373_v16 }
  0xbf   :  { %v380_v3 = vrot.slane %v379_v59, 2  ;;  %v388_v4 = vrot.slane %v387_v60, 2  ;;  %v405_v18 = vadd.f32 %v404_v8, %v403_v2 }
  0xc0   :  { %v398_v35 = vrot.slane %v397_v17, 1 }
  0xc1   :  { %v381_v9 = vadd.f32 %v380_v3, %v379_v59  ;;  %v389_v10 = vadd.f32 %v388_v4, %v387_v60  ;;  %v406_v36 = vrot.slane %v405_v18, 1 }
  0xc2   :  { %v399_v53 = vadd.f32 %v398_v35, %v397_v17 }
  0xc3   :  { %v382_v21 = vrot.slane %v381_v9, 1  ;;  %v390_v22 = vrot.slane %v389_v10, 1  ;;  %v407_v54 = vadd.f32 %v406_v36, %v405_v18 }
  0xc5   :  { %v341_v11 = vpop.f32.mrf.mxu0  ;;  %v354_v12 = vpop.f32.mrf.mxu1 }
  0xc6   :  { %v342_v13 = vadd.f32 %v341_v11, %v171_v23  ;;  %v355_v14 = vadd.f32 %v354_v12, %v200_v24  ;;  %v383_v23 = vadd.f32 %v382_v21, %v381_v9  ;;  %v391_v24 = vadd.f32 %v390_v22, %v389_v10 }
  0xc8   :  { %v358_v19 = vmax.f32 %v342_v13, 0.0  ;;  %v359_v20 = vmax.f32 %v355_v14, 0.0  ;;  %v384_v55 = vadd.f32 %v383_v23, %v367_v49  ;;  %v392_v56 = vadd.f32 %v391_v24, %v375_v50 }
  0xca   :  { %v409_v25 = vsel %vm360_vm1, %v358_v19, 0.0  ;;  %v417_v26 = vsel %vm360_vm1, %v359_v20, 0.0  ;;  %v400_v61 = vadd.f32 %v399_v53, %v384_v55  ;;  %v408_v62 = vadd.f32 %v407_v54, %v392_v56 }
  0xcb   :  { %v410_v33 = vrot.slane %v409_v25, 4  ;;  %v418_v34 = vrot.slane %v417_v26, 4 }
  0xcd   :  { %v411_v43 = vadd.f32 %v410_v33, %v409_v25  ;;  %v419_v44 = vadd.f32 %v418_v34, %v417_v26  ;;  %v343_v47 = vpop.f32.mrf.mxu0  ;;  %v356_v48 = vpop.f32.mrf.mxu1 }
  0xcf   :  { %v412_v51 = vrot.slane %v411_v43, 2  ;;  %v420_v52 = vrot.slane %v419_v44, 2 }
  0xd1   :  { %v413_v57 = vadd.f32 %v412_v51, %v411_v43  ;;  %v421_v58 = vadd.f32 %v420_v52, %v419_v44 }
  0xd3   :  { %v414_v59 = vrot.slane %v413_v57, 1  ;;  %v422_v60 = vrot.slane %v421_v58, 1 }
  0xd5   :  { %v415_v63 = vadd.f32 %v414_v59, %v413_v57  ;;  %v423_v0 = vadd.f32 %v422_v60, %v421_v58 }
  0xd7   :  { %v416_v1 = vadd.f32 %v415_v63, %v400_v61  ;;  %v424_v2 = vadd.f32 %v423_v0, %v408_v62 }
  0xd9   :  { %v425_v3 = vmul.f32 0.0625, %v416_v1  ;;  %v426_v4 = vmul.f32 0.0625, %v424_v2 }
  0xdb   :  { %v1358_v5 = vsub.f32 %v265_v31, %v425_v3  ;;  %v1362_v6 = vsub.f32 %v296_v45, %v425_v3  ;;  %v1366_v7 = vsub.f32 %v327_v41, %v425_v3  ;;  %v1368_v8 = vsub.f32 %v358_v19, %v425_v3 }
  0xdc   :  { %v1372_v9 = vsub.f32 %v266_v32, %v426_v4  ;;  %v1376_v10 = vsub.f32 %v297_v46, %v426_v4  ;;  %v1380_v29 = vsub.f32 %v328_v42, %v426_v4  ;;  %v1382_v31 = vsub.f32 %v359_v20, %v426_v4 }
  0xdd   :  { %v429_v37 = vmul.f32 %v1358_v5, %v1358_v5  ;;  %v449_v39 = vmul.f32 %v1362_v6, %v1362_v6  ;;  %v469_v30 = vmul.f32 %v1366_v7, %v1366_v7  ;;  %v489_v32 = vmul.f32 %v1368_v8, %v1368_v8 }
  0xde   :  { %v438_v40 = vmul.f32 %v1372_v9, %v1372_v9  ;;  %v458_v38 = vmul.f32 %v1376_v10, %v1376_v10  ;;  %v478_v41 = vmul.f32 %v1380_v29, %v1380_v29  ;;  %v498_v42 = vmul.f32 %v1382_v31, %v1382_v31 }
  0xdf   :  { %v430_v45 = vsel %vm360_vm1, %v429_v37, 0.0  ;;  %v450_v46 = vsel %vm360_vm1, %v449_v39, 0.0  ;;  %v470_v11 = vsel %vm360_vm1, %v469_v30, 0.0  ;;  %v490_v12 = vsel %vm360_vm1, %v489_v32, 0.0  ;;  %v985_v32 = vld [vmem:[%s1523_s11 + $0x8] sm:$0xff] }
  0xe0   :  { %v431_v13 = vrot.slane %v430_v45, 4  ;;  %v451_v14 = vrot.slane %v450_v46, 4  ;;  %v471_v15 = vrot.slane %v470_v11, 4  ;;  %v491_v16 = vrot.slane %v490_v12, 4  ;;  %742 = vmatpush.bf16.msra.mxu3 %v985_v32 }
  0xe1   :  { %v439_v17 = vsel %vm360_vm1, %v438_v40, 0.0  ;;  %v459_v18 = vsel %vm360_vm1, %v458_v38, 0.0  ;;  %v479_v19 = vsel %vm360_vm1, %v478_v41, 0.0  ;;  %v499_v20 = vsel %vm360_vm1, %v498_v42, 0.0  ;;  %v987_v40 = vld [vmem:[%s1523_s11 + $0x8] sm:$0xff] }
  0xe2   :  { %v432_v21 = vadd.f32 %v431_v13, %v430_v45  ;;  %v452_v22 = vadd.f32 %v451_v14, %v450_v46  ;;  %v472_v25 = vadd.f32 %v471_v15, %v470_v11  ;;  %v492_v26 = vadd.f32 %v491_v16, %v490_v12  ;;  %v989_v45 = vld [vmem:[%s1523_s11 + $0x8] sm:$0xff]  ;;  %777 = vmatpush.bf16.msrb.mxu0 %v987_v40  ;;  %v984_v15 = vld [vmem:[%s1523_s11] sm:$0xff] }
  0xe3   :  { %v440_v27 = vrot.slane %v439_v17, 4  ;;  %v460_v28 = vrot.slane %v459_v18, 4  ;;  %v480_v33 = vrot.slane %v479_v19, 4  ;;  %v500_v34 = vrot.slane %v499_v20, 4  ;;  %812 = vmatpush.bf16.msrb.mxu1 %v989_v45  ;;  %v986_v16 = vld [vmem:[%s1523_s11] sm:$0xff] }
  0xe4   :  { %v433_v35 = vrot.slane %v432_v21, 2  ;;  %v453_v36 = vrot.slane %v452_v22, 2  ;;  %v473_v23 = vrot.slane %v472_v25, 2  ;;  %v493_v24 = vrot.slane %v492_v26, 2  ;;  %743 = vmatpush.bf16.msra.mxu3 %v984_v15 }
  0xe5   :  { %v441_v43 = vadd.f32 %v440_v27, %v439_v17  ;;  %v461_v44 = vadd.f32 %v460_v28, %v459_v18  ;;  %v481_v47 = vadd.f32 %v480_v33, %v479_v19  ;;  %v501_v48 = vadd.f32 %v500_v34, %v499_v20  ;;  %v988_v17 = vld [vmem:[%s1523_s11] sm:$0xff] }
  0xe6   :  { %v434_v49 = vadd.f32 %v433_v35, %v432_v21  ;;  %v454_v50 = vadd.f32 %v453_v36, %v452_v22  ;;  %v474_v51 = vadd.f32 %v473_v23, %v472_v25  ;;  %v494_v52 = vadd.f32 %v493_v24, %v492_v26  ;;  %778 = vmatpush.bf16.msrb.mxu0 %v986_v16  ;;  %v983_v25 = vld [vmem:[%s1524_s12 + $0x8] sm:$0xff]  ;;  %v982_v28 = vld [vmem:[%s1524_s12] sm:$0xff] }
  0xe7   :  { %v442_v53 = vrot.slane %v441_v43, 2  ;;  %v462_v54 = vrot.slane %v461_v44, 2  ;;  %v482_v55 = vrot.slane %v481_v47, 2  ;;  %v502_v56 = vrot.slane %v501_v48, 2  ;;  %813 = vmatpush.bf16.msrb.mxu1 %v988_v17  ;;  %709 = vmatpush.bf16.msra.mxu2 %v983_v25  ;;  %v991_v24 = vld [vmem:[%s1523_s11 + $0x8] sm:$0xff] }
  0xe8   :  { %v435_v57 = vrot.slane %v434_v49, 1  ;;  %v455_v58 = vrot.slane %v454_v50, 1  ;;  %v475_v59 = vrot.slane %v474_v51, 1  ;;  %v495_v2 = vrot.slane %v494_v52, 1 }
  0xe9   :  { %v443_v60 = vadd.f32 %v442_v53, %v441_v43  ;;  %v463_v61 = vadd.f32 %v462_v54, %v461_v44  ;;  %v483_v62 = vadd.f32 %v482_v55, %v481_v47  ;;  %v503_v63 = vadd.f32 %v502_v56, %v501_v48  ;;  %v990_v47 = vld [vmem:[%s1523_s11] sm:$0xff] }
  0xea   :  { %v436_v0 = vadd.f32 %v435_v57, %v434_v49  ;;  %v456_v1 = vadd.f32 %v455_v58, %v454_v50  ;;  %v476_v30 = vadd.f32 %v475_v59, %v474_v51  ;;  %v496_v11 = vadd.f32 %v495_v2, %v494_v52  ;;  %v520_v51 = vld [vmem:[%s1517_s5] sm:$0x1] }
  0xeb   :  { %v444_v3 = vrot.slane %v443_v60, 1  ;;  %v464_v4 = vrot.slane %v463_v61, 1  ;;  %v484_v37 = vrot.slane %v483_v62, 1  ;;  %v504_v42 = vrot.slane %v503_v63, 1  ;;  %710 = vmatpush.bf16.msra.mxu2 %v982_v28  ;;  %v533_v56 = vld [vmem:[%s1519_s7] sm:$0x1] }
  0xec   :  { %v457_v39 = vadd.f32 %v456_v1, %v436_v0  ;;  %v1002_v58 = vld [vmem:[%s1518_s6] ss:$0 sm:$0xff]  ;;  %s1193_s6 = smov [#allocation11]  }
  0xed   :  { %v445_v38 = vadd.f32 %v444_v3, %v443_v60  ;;  %v465_v41 = vadd.f32 %v464_v4, %v463_v61  ;;  %v485_v13 = vadd.f32 %v484_v37, %v483_v62  ;;  %v505_v19 = vadd.f32 %v504_v42, %v503_v63  ;;  %v1003_v2 = vld [vmem:[%s1520_s8] ss:$0 sm:$0xff]  ;;  %s862_s7 = sshll.u32 %s1193_s6, 4  ;;  %s863_s7 = int_to_ptr.vmem [resolvable:$true] %s862_s7 }
  0xee   :  { %v477_v46 = vadd.f32 %v476_v30, %v457_v39 }
  0xef   :  { %v466_v12 = vadd.f32 %v465_v41, %v445_v38  ;;  %847 = vmatpush.bf16.msrb.mxu2 %v991_v24 }
  0xf0   :  { %v497_v14 = vadd.f32 %v496_v11, %v477_v46 }
  0xf1   :  { %v486_v18 = vadd.f32 %v485_v13, %v466_v12 }
  0xf2   :  { %v507_v20 = vmul.f32 0.0625, %v497_v14 }
  0xf3   :  { %v506_v21 = vadd.f32 %v505_v19, %v486_v18  ;;  %848 = vmatpush.bf16.msrb.mxu2 %v990_v47 }
  0xf4   :  { %v509_v22 = vadd.f32 1e-05, %v507_v20 }
  0xf5   :  { %v508_v26 = vmul.f32 0.0625, %v506_v21 }
  0xf6   :  { %1004 = vrsqrt.f32 %v509_v22  ;;  %vm516_vm3 = vweird.f32 %v509_v22 }
  0xf7   :  { %v522_v27 = vadd.f32 1e-05, %v508_v26 }
  0xf9   :  { %1006 = vrsqrt.f32 %v522_v27  ;;  %vm529_vm6 = vweird.f32 %v522_v27 }
  0xfc   :  { %v1005_v33 = vpop.eup %1004 }
  0xfd   :  { %v511_v34 = vmul.f32 %v1005_v33, %v509_v22  ;;  %vm517_vm2 = vweird.f32 %v1005_v33 }
  0xfe   :  { %vm518_vm4 = vmor %vm516_vm3, %vm517_vm2 }
  0xff   :  { %v1007_v35 = vpop.eup %1006  ;;  %v512_v36 = vmul.f32 %v1005_v33, %v511_v34 }
 0x100   :  { %v524_v23 = vmul.f32 %v1007_v35, %v522_v27  ;;  %vm530_vm5 = vweird.f32 %v1007_v35 }
 0x101   :  { %v513_v43 = vmul.f32 0.5, %v512_v36  ;;  %vm531_vm7 = vmor %vm529_vm6, %vm530_vm5 }
 0x102   :  { %v525_v44 = vmul.f32 %v1007_v35, %v524_v23 }
 0x103   :  { %v514_v48 = vsub.f32 1.5, %v513_v43 }
 0x104   :  { %v526_v49 = vmul.f32 0.5, %v525_v44 }
 0x105   :  { %v515_v50 = vmul.f32 %v1005_v33, %v514_v48 }
 0x106   :  { %v527_v52 = vsub.f32 1.5, %v526_v49 }
 0x107   :  { %v519_v53 = vsel %vm518_vm4, %v1005_v33, %v515_v50 }
 0x108   :  { %v521_v54 = vmul.f32 %v520_v51, %v519_v53  ;;  %v528_v55 = vmul.f32 %v1007_v35, %v527_v52 }
 0x10a   :  { %v535_v57 = vperm.slane %v521_v54, 0  ;;  %v532_v59 = vsel %vm531_vm7, %v1007_v35, %v528_v55  ;;  %v625_v55 = vld [vmem:[#allocation8 + $0x8] sm:$0xf] }
 0x10b   :  { %v534_v60 = vmul.f32 %v533_v56, %v532_v59 }
 0x10c   :  { %v536_v61 = vmul.f32 %v535_v57, %v1358_v5  ;;  %v577_v62 = vmul.f32 %v535_v57, %v1362_v6  ;;  %v611_v63 = vmul.f32 %v535_v57, %v1366_v7  ;;  %v645_v0 = vmul.f32 %v535_v57, %v1368_v8 }
 0x10d   :  { %v542_v1 = vperm.slane %v534_v60, 0 }
 0x10e   :  { %v1454_v3 = vadd.f32 %v1002_v58, %v536_v61  ;;  %v1456_v4 = vadd.f32 %v1002_v58, %v577_v62  ;;  %v1458_v37 = vadd.f32 %v1002_v58, %v611_v63  ;;  %v1471_v40 = vadd.f32 %v1002_v58, %v645_v0  ;;  %v558_v61 = vld [vmem:[#allocation8] sm:$0xf] }
 0x10f   :  { %v647_v39 = vmul.f32 %v542_v1, %v1382_v31  ;;  %v613_v5 = vmul.f32 %v542_v1, %v1380_v29  ;;  %v543_v6 = vmul.f32 %v542_v1, %v1372_v9  ;;  %v579_v41 = vmul.f32 %v542_v1, %v1376_v10 }
 0x110   :  { %v716_v7 = vpack.c.bf16 %v1454_v3, %v1454_v3  ;;  %v751_v8 = vpack.c.bf16 %v1456_v4, %v1456_v4  ;;  %v786_v30 = vpack.c.bf16 %v1458_v37, %v1458_v37  ;;  %v679_v32 = vadd.f32 %v1456_v4, %v1454_v3 }
 0x111   :  { %v648_v38 = vadd.f32 %v1003_v2, %v647_v39  ;;  %v614_v31 = vadd.f32 %v1003_v2, %v613_v5  ;;  %v548_v29 = vadd.f32 %v1003_v2, %v543_v6  ;;  %v580_v16 = vadd.f32 %v1003_v2, %v579_v41  ;;  %v627_v2 = vld [vmem:[#allocation10 + $0x8] sm:$0xf]  ;;  %v659_v6 = vld [vmem:[#allocation8 + $0xc] sm:$0xf]  ;;  %v591_v41 = vld [vmem:[#allocation8 + $0x4] sm:$0xf] }
 0x112   :  { %946 = vmatmul.msk.bf16.vlgmr.msra.gmra.mxu3 %vm158_vm0, %v716_v7  ;;  %955 = vmatmul.msk.bf16.vlgmr.msrb.gmra.mxu0 %vm158_vm0, %v751_v8  ;;  %v680_v9 = vadd.f32 %v679_v32, %v1458_v37  ;;  %v821_v23 = vpack.c.bf16 %v1471_v40, %v1471_v40  ;;  %v628_v43 = vmul.f32 0.5, %v1458_v37  ;;  %v560_v53 = vmul.f32 0.5, %v1454_v3 }
 0x113   :  { %v650_v42 = vmin.f32 %v648_v38, 20.0  ;;  %964 = vmatmul.msk.bf16.vlgmr.msrb.gmra.mxu1 %vm158_vm0, %v786_v30  ;;  %v616_v45 = vmin.f32 %v614_v31, 20.0  ;;  %v550_v11 = vmin.f32 %v548_v29, 20.0  ;;  %v582_v18 = vmin.f32 %v580_v16, 20.0  ;;  %v559_v30 = vld [vmem:[#allocation10] sm:$0xf] }
 0x114   :  { %v681_v46 = vadd.f32 %v680_v9, %v1471_v40  ;;  %vm649_vm8 = vcmp.gt.f32.partialorder %v648_v38, 20.0  ;;  %vm615_vm9 = vcmp.gt.f32.partialorder %v614_v31, 20.0  ;;  %vm549_vm10 = vcmp.gt.f32.partialorder %v548_v29, 20.0 }
 0x115   :  { %v651_v12 = vmul.f32 1.442695, %v650_v42  ;;  %v617_v13 = vmul.f32 1.442695, %v616_v45  ;;  %v551_v15 = vmul.f32 1.442695, %v550_v11  ;;  %v629_v56 = vmul.f32 %v628_v43, %v1458_v37 }
 0x116   :  { %v682_v14 = vmul.f32 0.25, %v681_v46  ;;  %v583_v10 = vmul.f32 1.442695, %v582_v18  ;;  %v662_v54 = vmul.f32 0.5, %v1471_v40  ;;  %vm581_vm11 = vcmp.gt.f32.partialorder %v580_v16, 20.0 }
 0x117   :  { %1008 = vpow2.f32 %v651_v12  ;;  %v561_v9 = vmul.f32 %v560_v53, %v1454_v3  ;;  %v594_v42 = vmul.f32 0.5, %v1456_v4  ;;  %v661_v46 = vld [vmem:[#allocation10 + $0xc] sm:$0xf] }
 0x118   :  { %v683_v17 = vpack.c.bf16 %v682_v14, %v682_v14  ;;  %1010 = vpow2.f32 %v617_v13 }
 0x119   :  { %1012 = vpow2.f32 %v551_v15 }
 0x11a   :  { %937 = vmatmul.msk.bf16.vlgmr.msra.gmra.mxu2 %vm158_vm0, %v683_v17  ;;  %1014 = vpow2.f32 %v583_v10 }
 0x11d   :  { %v1009_v19 = vpop.eup %1008 }
 0x11e   :  { %v1011_v20 = vpop.eup %1010  ;;  %v653_v21 = vadd.f32 1.0, %v1009_v19 }
 0x11f   :  { %v1013_v22 = vpop.eup %1012  ;;  %v619_v25 = vadd.f32 1.0, %v1011_v20 }
 0x120   :  { %1016 = vlog2.f32 %v653_v21  ;;  %v553_v26 = vadd.f32 1.0, %v1013_v22  ;;  %v1015_v27 = vpop.eup %1014 }
 0x121   :  { %1018 = vlog2.f32 %v619_v25  ;;  %v585_v28 = vadd.f32 1.0, %v1015_v27  ;;  %v663_v25 = vmul.f32 %v662_v54, %v1471_v40  ;;  %v593_v27 = vld [vmem:[#allocation10 + $0x4] sm:$0xf] }
 0x122   :  { %1020 = vlog2.f32 %v553_v26 }
 0x123   :  { %1022 = vlog2.f32 %v585_v28 }
 0x126   :  { %v1017_v33 = vpop.eup %1016 }
 0x127   :  { %v1019_v34 = vpop.eup %1018  ;;  %v655_v35 = vmul.f32 0.6931472, %v1017_v33 }
 0x128   :  { %v1021_v36 = vpop.eup %1020  ;;  %v621_v24 = vmul.f32 0.6931472, %v1019_v34  ;;  %v595_v34 = vmul.f32 %v594_v42, %v1456_v4 }
 0x129   :  { %v555_v44 = vmul.f32 0.6931472, %v1021_v36  ;;  %v656_v47 = vsel %vm649_vm8, %v648_v38, %v655_v35  ;;  %v1023_v50 = vpop.eup %1022 }
 0x12a   :  { %973 = vmatmul.msk.bf16.vlgmr.msrb.gmra.mxu2 %vm158_vm0, %v821_v23  ;;  %v622_v48 = vsel %vm615_vm9, %v614_v31, %v621_v24  ;;  %v657_v49 = vadd.f32 1e-10, %v656_v47  ;;  %v587_v62 = vmul.f32 0.6931472, %v1023_v50 }
 0x12b   :  { %v623_v51 = vadd.f32 1e-10, %v622_v48  ;;  %v556_v52 = vsel %vm549_vm10, %v548_v29, %v555_v44 }
 0x12c   :  { %v557_v57 = vadd.f32 1e-10, %v556_v52  ;;  %v667_v58 = vmul.f32 %v657_v49, %v657_v49  ;;  %v664_v1 = vmul.f32 %v657_v49, %v1471_v40  ;;  %v588_v8 = vsel %vm581_vm11, %v580_v16, %v587_v62 }
 0x12d   :  { %v630_v59 = vmul.f32 %v623_v51, %v1458_v37  ;;  %v633_v60 = vmul.f32 %v623_v51, %v623_v51  ;;  %1024 = vlog2.f32 %v623_v51  ;;  %v589_v37 = vadd.f32 1e-10, %v588_v8 }
 0x12e   :  { %v562_v63 = vmul.f32 %v557_v57, %v1454_v3  ;;  %v565_v0 = vmul.f32 %v557_v57, %v557_v57  ;;  %1026 = vlog2.f32 %v557_v57  ;;  %v928_v7 = vadd.f32 -1.0, %v667_v58 }
 0x12f   :  { %v631_v39 = vmul.f32 %v630_v59, %v625_v55  ;;  %v927_v5 = vadd.f32 -1.0, %v633_v60  ;;  %1028 = vlog2.f32 %v657_v49  ;;  %v665_v11 = vmul.f32 %v664_v1, %v659_v6 }
 0x130   :  { %v563_v32 = vmul.f32 %v562_v63, %v558_v61  ;;  %v925_v38 = vadd.f32 -1.0, %v565_v0  ;;  %v669_v29 = vmul.f32 0.5, %v928_v7  ;;  %v596_v12 = vmul.f32 %v589_v37, %v1456_v4 }
 0x131   :  { %v635_v31 = vmul.f32 0.5, %v927_v5  ;;  %v599_v13 = vmul.f32 %v589_v37, %v589_v37  ;;  %v632_v15 = vadd.f32 %v631_v39, %v629_v56  ;;  %1030 = vlog2.f32 %v589_v37 }
 0x132   :  { %v567_v45 = vmul.f32 0.5, %v925_v38  ;;  %v564_v17 = vadd.f32 %v563_v32, %v561_v9  ;;  %v597_v20 = vmul.f32 %v596_v12, %v591_v41  ;;  %v670_v26 = vmul.f32 %v669_v29, %v661_v46 }
 0x133   :  { %v1025_v14 = vpop.eup %1024  ;;  %v636_v16 = vmul.f32 %v635_v31, %v627_v2  ;;  %v926_v3 = vadd.f32 -1.0, %v599_v13  ;;  %v666_v23 = vadd.f32 %v665_v11, %v663_v25 }
 0x134   :  { %v1027_v18 = vpop.eup %1026  ;;  %v639_v10 = vmul.f32 0.6931472, %v1025_v14  ;;  %v568_v19 = vmul.f32 %v567_v45, %v559_v30  ;;  %v598_v43 = vadd.f32 %v597_v20, %v595_v34 }
 0x135   :  { %v637_v21 = vadd.f32 %v636_v16, %v632_v15  ;;  %v571_v22 = vmul.f32 0.6931472, %v1027_v18  ;;  %v1029_v28 = vpop.eup %1028  ;;  %v601_v35 = vmul.f32 0.5, %v926_v3  ;;  %v671_v49 = vadd.f32 %v670_v26, %v666_v23 }
 0x136   :  { %v569_v33 = vadd.f32 %v568_v19, %v564_v17  ;;  %v673_v50 = vmul.f32 0.6931472, %v1029_v28 }
 0x137   :  { %v640_v36 = vsub.f32 %v637_v21, %v639_v10  ;;  %v602_v44 = vmul.f32 %v601_v35, %v593_v27  ;;  %v1031_v47 = vpop.eup %1030 }
 0x138   :  { %v572_v24 = vsub.f32 %v569_v33, %v571_v22  ;;  %v605_v52 = vmul.f32 0.6931472, %v1031_v47  ;;  %v674_v53 = vsub.f32 %v671_v49, %v673_v50 }
 0x139   :  { %v641_v48 = vsel %vm360_vm1, %v640_v36, 0.0  ;;  %v603_v51 = vadd.f32 %v602_v44, %v598_v43 }
 0x13a   :  { %642 = vadd.xlane.f32.xlu1 %v641_v48  ;;  %v573_v40 = vsel %vm360_vm1, %v572_v24, 0.0  ;;  %v675_v4 = vsel %vm360_vm1, %v674_v53, 0.0 }
 0x13b   :  { %574 = vadd.xlane.f32.xlu0 %v573_v40  ;;  %v606_v54 = vsub.f32 %v603_v51, %v605_v52 }
 0x13d   :  { %v607_v55 = vsel %vm360_vm1, %v606_v54, 0.0 }
 0x142   :  { %676 = vadd.xlane.f32.xlu1 %v675_v4 }
 0x143   :  { %608 = vadd.xlane.f32.xlu0 %v607_v55 }
 0x18f   :  { %v780_v56 = vpop.f32.mrf.mxu0 }
 0x190   :  { %v815_v57 = vpop.f32.mrf.mxu1 }
 0x195   :  { %v745_v58 = vpop.f32.mrf.mxu3 }
 0x197   :  { %v782_v59 = vpop.f32.mrf.mxu0 }
 0x198   :  { %v817_v60 = vpop.f32.mrf.mxu1 }
 0x19d   :  { %v712_v61 = vpop.f32.mrf.mxu2  ;;  %v747_v62 = vpop.f32.mrf.mxu3 }
 0x19e   :  { %v746_v63 = vadd.f32 %v745_v58, %v712_v61  ;;  %v781_v0 = vadd.f32 %v780_v56, %v712_v61  ;;  %v816_v1 = vadd.f32 %v815_v57, %v712_v61 }
 0x1a0   :  { %750 = vst.msk [vmem:[#allocation11] sm:$0xf] %vm749_vm12, %v746_v63 }
 0x1a1   :  { %785 = vst.msk [vmem:[#allocation11 + $0x4] sm:$0xf] %vm749_vm12, %v781_v0 }
 0x1a2   :  { %820 = vst.msk [vmem:[#allocation11 + $0x8] sm:$0xf] %vm749_vm12, %v816_v1 }
 0x1a5   :  { %v714_v2 = vpop.f32.mrf.mxu2 }
 0x1ad   :  { %v850_v39 = vpop.f32.mrf.mxu2  ;;  %v643_v7 = vpop.xlane.xlu1 %642 }
 0x1ae   :  { %v575_v5 = vpop.xlane.xlu0 %574  ;;  %v851_v6 = vadd.f32 %v850_v39, %v712_v61 }
 0x1b0   :  { %855 = vst.msk [vmem:[#allocation11 + $0xc] sm:$0xf] %vm749_vm12, %v851_v6 }
 0x1b1   :  { %870 = dma.vmem_to_hbm [thread:$0]  %s863_s7, 256, %s865_s16, [#allocation4], %s1185_s21, %s1185_s21, %s1186_s22  }
 0x1b5   :  { %v852_v8 = vpop.f32.mrf.mxu2  ;;  %v677_v37 = vpop.xlane.xlu1 %676 }
 0x1b6   :  { %v609_v30 = vpop.xlane.xlu0 %608 }
 0x1b7   :  { %v610_v32 = vadd.f32 %v609_v30, %v575_v5 }
 0x1b9   :  { %v644_v38 = vadd.f32 %v643_v7, %v610_v32 }
 0x1bb   :  { %v678_v31 = vadd.f32 %v677_v37, %v644_v38 }
 0x1bd   :  { %857 = vst.msk [vmem:[%s1526_s14] sm:$0xf] %vm856_vm13, %v678_v31 }
 0x1be   :  { %1182 = dma.done.wait [#allocation4], 256  }
 0x1bf   :  { %1183 = vsyncadd [#allocation4], 4294967040 }
 0x1c0   :  { %879 = vsyncpa [#allocation3], 1 }
 0x1c1   :  { %880 = vsyncpa [#allocation6], 1 }
 0x1c2   :  { %881 = vsyncpa [#allocation9], 1 }
 0x1c3   :  { %882 = vsyncpa [#allocation4], 1 }

</bundles_post_ra>
